<compile_context>
chip_gen: v5e
topology: v5e:2x2
jax: 0.10.0
libtpu: 0.0.40
codegen_flags: <defaults>
</compile_context>

<pallas_src>
import math
from functools import partial

import jax
import jax.numpy as jnp
from jax import lax
from jax.experimental import pallas as pl
from jax.experimental.pallas import tpu as pltpu

PRIOR_SIGMA_1 = 1.0
PRIOR_SIGMA_2 = 0.002
PRIOR_PI = 0.5

# KL mixture constants, folded at trace time:
#   kl = 0.5 * (C_LOG - 2*log(sigma) + (sigma^2 + mu^2) * C_INV - 1)
_C_LOG = 2.0 * (PRIOR_PI * math.log(PRIOR_SIGMA_1)
                + (1.0 - PRIOR_PI) * math.log(PRIOR_SIGMA_2))
_C_INV = PRIOR_PI / PRIOR_SIGMA_1 ** 2 + (1.0 - PRIOR_PI) / PRIOR_SIGMA_2 ** 2

_NEG_BIG = -1e30   # softplus(_NEG_BIG) == 0.0 exactly in f32 (padding fill)


def _round_up(v, m):
    return ((v + m - 1) // m) * m


def _full_spec(shape):
    # whole-array VMEM block (gridless call)
    return pl.BlockSpec(shape, lambda: tuple(0 for _ in shape))


# ---------------------------------------------------------------------------
# Fused kernel: sampled forward through all layers + total KL, one pallas_call.
# ---------------------------------------------------------------------------
def _fused_bnn_kernel(x_ref, wmu_ref, wrho_ref, bmu_ref, brho_ref,
                      weps_ref, beps_ref, y_ref, kl_ref, *, dims, in_pads):
    h = x_ref[...]                                    # (B_pad, D_pad) f32
    n_layers = len(dims) - 1
    kl_total = jnp.zeros((1, 1), jnp.float32)

    for l in range(n_layers):                         # static unroll (tiny L)
        in_f, out_f = dims[l], dims[l + 1]
        in_p = in_pads[l]                             # round_up(in_f, 8)

        # --- sample weights on valid rows only (cuts EUP/VPU work 4-8x and
        #     keeps live vregs small; weights stored pre-transposed (in,out)) ---
        wmu = wmu_ref[l, :in_p, :]                    # (in_p, D_pad)
        wsig = jax.nn.softplus(wrho_ref[l, :in_p, :]) # numerically stable
        w = wmu + wsig * weps_ref[l, :in_p, :]

        bmu = bmu_ref[l]                              # (1, D_pad)
        bsig = jax.nn.softplus(brho_ref[l])
        b = bmu + bsig * beps_ref[l]

        # Padded columns have mu == 0 and sigma == softplus(-1e30) == 0, so
        # sampled w/b are exactly zero there -> no per-layer output masking.
        y = jnp.dot(h[:, :in_p], w,
                    preferred_element_type=jnp.float32,
                    precision=lax.Precision.HIGHEST) + b
        h = jnp.maximum(y, 0.0)                       # ReLU after every layer

        # --- KL fused in (params already VMEM-resident).  Padded cells have
        #     sigma == 0 -> log == -inf, so mask BEFORE the sum. ---
        klw = 0.5 * (_C_LOG - 2.0 * jnp.log(wsig)
                     + (wsig * wsig + wmu * wmu) * _C_INV - 1.0)
        row = lax.broadcasted_iota(jnp.int32, klw.shape, 0)
        col = lax.broadcasted_iota(jnp.int32, klw.shape, 1)
        kl_total = kl_total + jnp.sum(
            jnp.where((row < in_f) & (col < out_f), klw, 0.0))

        klb = 0.5 * (_C_LOG - 2.0 * jnp.log(bsig)
                     + (bsig * bsig + bmu * bmu) * _C_INV - 1.0)
        bcol = lax.broadcasted_iota(jnp.int32, klb.shape, 1)
        kl_total = kl_total + jnp.sum(jnp.where(bcol < out_f, klb, 0.0))

    y_ref[...] = h.astype(y_ref.dtype)
    kl_ref[...] = kl_total


# ---------------------------------------------------------------------------
# Host-side glue
# ---------------------------------------------------------------------------
def init_bayesian_linear(key, in_features, out_features):
    """Init matching BayesianLinear.reset_parameters (shapes & distributions)."""
    kw, kb = jax.random.split(key)
    bound = 1.0 / math.sqrt(in_features)      # kaiming_uniform_(a=sqrt(5))
    weight_mu = jax.random.uniform(
        kw, (out_features, in_features), jnp.float32, -bound, bound)
    weight_rho = jnp.full((out_features, in_features), -5.0, jnp.float32)
    bias_mu = jax.random.uniform(kb, (out_features,), jnp.float32, -0.1, 0.1)
    bias_rho = jnp.full((out_features,), -5.0, jnp.float32)
    return dict(weight_mu=weight_mu, weight_rho=weight_rho,
                bias_mu=bias_mu, bias_rho=bias_rho)


def pack_params(params, dims, d_pad):
    """Pad each layer to lane-dense (d_pad, d_pad), pre-transposed to (in, out).
    Padded rho cells are filled with a huge negative value so softplus == 0
    exactly and padded mu cells with 0 -> padded outputs are exactly zero."""
    n_layers = len(dims) - 1
    wmu = jnp.zeros((n_layers, d_pad, d_pad), jnp.float32)
    wrho = jnp.full((n_layers, d_pad, d_pad), _NEG_BIG, jnp.float32)
    bmu = jnp.zeros((n_layers, 1, d_pad), jnp.float32)
    brho = jnp.full((n_layers, 1, d_pad), _NEG_BIG, jnp.float32)
    for l, p in enumerate(params):
        out_f, in_f = p["weight_mu"].shape
        wmu = wmu.at[l, :in_f, :out_f].set(p["weight_mu"].T)
        wrho = wrho.at[l, :in_f, :out_f].set(p["weight_rho"].T)
        bmu = bmu.at[l, 0, :out_f].set(p["bias_mu"])
        brho = brho.at[l, 0, :out_f].set(p["bias_rho"])
    return wmu, wrho, bmu, brho


def _in_pads(dims, d_pad):
    return tuple(min(_round_up(max(d, 1), 8), d_pad) for d in dims[:-1])


def draw_eps(key, dims, d_pad):
    """Host-side standard-normal noise for the reparameterization trick."""
    n_layers = len(dims) - 1
    max_in_p = max(_in_pads(dims, d_pad))
    kw, kb = jax.random.split(key)
    weps = jax.random.normal(kw, (n_layers, max_in_p, d_pad), jnp.float32)
    beps = jax.random.normal(kb, (n_layers, 1, d_pad), jnp.float32)
    return weps, beps


def bnn_forward(packed, dims, x, weps, beps):
    """Matches BayesianNeuralNetwork.forward: returns (activations, kl_sum)."""
    wmu, wrho, bmu, brho = packed
    d_pad = wmu.shape[-1]
    in_pads = _in_pads(dims, d_pad)

    B = x.shape[0]
    b_pad = _round_up(max(B, 8), 8)
    x_pad = jnp.zeros((b_pad, d_pad), jnp.float32).at[:B, :dims[0]].set(
        x.astype(jnp.float32))

    y_pad, kl = pl.pallas_call(
        partial(_fused_bnn_kernel, dims=tuple(dims), in_pads=in_pads),
        out_shape=(jax.ShapeDtypeStruct((b_pad, d_pad), jnp.float32),
                   jax.ShapeDtypeStruct((1, 1), jnp.float32)),
        in_specs=[
            _full_spec((b_pad, d_pad)),
            _full_spec(wmu.shape), _full_spec(wrho.shape),
            _full_spec(bmu.shape), _full_spec(brho.shape),
            _full_spec(weps.shape), _full_spec(beps.shape),
        ],
        out_specs=(_full_spec((b_pad, d_pad)), _full_spec((1, 1))),
    )(x_pad, wmu, wrho, bmu, brho, weps, beps)
    return y_pad[:B, :dims[-1]], kl[0, 0]


# ---------------------------------------------------------------------------
# Pure-JAX reference (same math, same eps) for verification
# ---------------------------------------------------------------------------
def _ref_forward(params, dims, x, weps, beps):
    def klg(mu, sig, s):
        return 0.5 * (jnp.log(s * s / (sig * sig))
                      + (sig * sig + mu * mu) / (s * s) - 1.0)

    h = x.astype(jnp.float32)
    kl_total = jnp.float32(0.0)
    for l, p in enumerate(params):
        in_f, out_f = dims[l], dims[l + 1]
        wsig = jax.nn.softplus(p["weight_rho"])        # (out, in)
        bsig = jax.nn.softplus(p["bias_rho"])          # (out,)
        eps_w = weps[l, :in_f, :out_f]                 # (in, out) layout
        eps_b = beps[l, 0, :out_f]
        w_t = p["weight_mu"].T + wsig.T * eps_w        # (in, out)
        b = p["bias_mu"] + bsig * eps_b
        h = jnp.maximum(
            jnp.dot(h, w_t, precision=lax.Precision.HIGHEST) + b, 0.0)
        klw = (PRIOR_PI * klg(p["weight_mu"], wsig, PRIOR_SIGMA_1)
               + (1 - PRIOR_PI) * klg(p["weight_mu"], wsig, PRIOR_SIGMA_2))
        klb = (PRIOR_PI * klg(p["bias_mu"], bsig, PRIOR_SIGMA_1)
               + (1 - PRIOR_PI) * klg(p["bias_mu"], bsig, PRIOR_SIGMA_2))
        kl_total = kl_total + jnp.sum(klw) + jnp.sum(klb)
    return h, kl_total


# ---------------------------------------------------------------------------
# Demo / self-test
# ---------------------------------------------------------------------------
if __name__ == "__main__":
    input_dim = 16
    hidden_dims = [32, 32]
    output_dim = 8
    batch = 4

    dims = [input_dim] + hidden_dims + [output_dim]
    d_pad = _round_up(max(dims), 128)        # lane-dense feature width (128)

    key = jax.random.PRNGKey(0)
    key, xkey, ekey0, ekey1 = jax.random.split(key, 4)
    params = []
    for i in range(len(dims) - 1):
        key, sub = jax.random.split(key)
        params.append(init_bayesian_linear(sub, dims[i], dims[i + 1]))
    packed = pack_params(params, dims, d_pad)

    x = jax.random.normal(xkey, (batch, input_dim), jnp.float32)

    weps0, beps0 = draw_eps(ekey0, dims, d_pad)
    weps1, beps1 = draw_eps(ekey1, dims, d_pad)

    out0, kl0 = bnn_forward(packed, dims, x, weps0, beps0)
    out0 = jax.block_until_ready(out0)
    kl0 = jax.block_until_ready(kl0)
    out1, _ = bnn_forward(packed, dims, x, weps1, beps1)
    out1 = jax.block_until_ready(out1)

    # shape / sanity checks
    assert out0.shape == (batch, output_dim)
    assert kl0.shape == ()
    assert bool(jnp.all(jnp.isfinite(out0)))
    assert bool(jnp.isfinite(kl0))
    assert bool(jnp.all(out0 >= 0.0))              # ReLU applied every layer
    assert bool(jnp.any(out0 != out1))             # different noise -> different sample

    # exact-math comparison against a pure-JAX reference using the SAME eps
    ref_y, ref_kl = _ref_forward(params, dims, x, weps0, beps0)
    ref_y = jax.block_until_ready(ref_y)
    assert bool(jnp.allclose(out0, ref_y, rtol=1e-4, atol=1e-4)), \
        (out0, ref_y)
    assert bool(jnp.allclose(kl0, ref_kl, rtol=2e-3, atol=1e-2)), \
        (kl0, ref_kl)

    print("KERNEL_OK")
</pallas_src>

<mosaic_0001>
module attributes {stable_mosaic.version = 11 : i64} {
  func.func @_fused_bnn_kernel(%arg0: memref<8x128xf32, #tpu.memory_space<vmem>>, %arg1: memref<3x128x128xf32, #tpu.memory_space<vmem>>, %arg2: memref<3x128x128xf32, #tpu.memory_space<vmem>>, %arg3: memref<3x1x128xf32, #tpu.memory_space<vmem>>, %arg4: memref<3x1x128xf32, #tpu.memory_space<vmem>>, %arg5: memref<3x32x128xf32, #tpu.memory_space<vmem>>, %arg6: memref<3x1x128xf32, #tpu.memory_space<vmem>>, %arg7: memref<8x128xf32, #tpu.memory_space<vmem>>, %arg8: memref<1x1xf32, #tpu.memory_space<vmem>>) attributes {dimension_semantics = [], scalar_prefetch = 0 : i64, scratch_operands = 0 : i64, tpu.core_type = #tpu.core_type<tc>} {
    %c0 = arith.constant 0 : index
    %c0_0 = arith.constant 0 : index
    %0 = vector.load %arg0[%c0, %c0_0] : memref<8x128xf32, #tpu.memory_space<vmem>>, vector<8x128xf32>
    %cst = arith.constant 0.000000e+00 : f32
    %1 = vector.broadcast %cst : f32 to vector<1x1xf32>
    %c0_1 = arith.constant 0 : index
    %c0_2 = arith.constant 0 : index
    %c0_3 = arith.constant 0 : index
    %2 = vector.load %arg1[%c0_1, %c0_2, %c0_3] : memref<3x128x128xf32, #tpu.memory_space<vmem>>, vector<1x16x128xf32>
    %3 = vector.shape_cast %2 : vector<1x16x128xf32> to vector<16x128xf32>
    %c0_4 = arith.constant 0 : index
    %c0_5 = arith.constant 0 : index
    %c0_6 = arith.constant 0 : index
    %4 = vector.load %arg2[%c0_4, %c0_5, %c0_6] : memref<3x128x128xf32, #tpu.memory_space<vmem>>, vector<1x16x128xf32>
    %5 = vector.shape_cast %4 : vector<1x16x128xf32> to vector<16x128xf32>
    %cst_7 = arith.constant 0.000000e+00 : f32
    %6 = vector.broadcast %cst_7 : f32 to vector<16x128xf32>
    %7 = arith.maximumf %5, %6 : vector<16x128xf32>
    %8 = vector.broadcast %cst_7 : f32 to vector<16x128xf32>
    %9 = arith.subf %5, %8 : vector<16x128xf32>
    %10 = arith.cmpf one, %9, %9 : vector<16x128xf32>
    %11 = vector.broadcast %cst_7 : f32 to vector<16x128xf32>
    %12 = arith.addf %5, %11 : vector<16x128xf32>
    %13 = math.absf %9 : vector<16x128xf32>
    %cst_8 = arith.constant 0.000000e+00 : f32
    %14 = vector.broadcast %cst_8 : f32 to vector<16x128xf32>
    %15 = arith.subf %14, %13 : vector<16x128xf32>
    %16 = math.exp %15 : vector<16x128xf32>
    %17 = math.log1p %16 : vector<16x128xf32>
    %18 = arith.addf %7, %17 : vector<16x128xf32>
    %19 = arith.select %10, %12, %18 : vector<16x128xi1>, vector<16x128xf32>
    %c0_9 = arith.constant 0 : index
    %c0_10 = arith.constant 0 : index
    %c0_11 = arith.constant 0 : index
    %20 = vector.load %arg5[%c0_9, %c0_10, %c0_11] : memref<3x32x128xf32, #tpu.memory_space<vmem>>, vector<1x16x128xf32>
    %21 = vector.shape_cast %20 : vector<1x16x128xf32> to vector<16x128xf32>
    %22 = arith.mulf %19, %21 : vector<16x128xf32>
    %23 = arith.addf %3, %22 : vector<16x128xf32>
    %c0_12 = arith.constant 0 : index
    %c0_13 = arith.constant 0 : index
    %c0_14 = arith.constant 0 : index
    %24 = vector.load %arg3[%c0_12, %c0_13, %c0_14] : memref<3x1x128xf32, #tpu.memory_space<vmem>>, vector<1x1x128xf32>
    %25 = vector.shape_cast %24 : vector<1x1x128xf32> to vector<1x128xf32>
    %c0_15 = arith.constant 0 : index
    %c0_16 = arith.constant 0 : index
    %c0_17 = arith.constant 0 : index
    %26 = vector.load %arg4[%c0_15, %c0_16, %c0_17] : memref<3x1x128xf32, #tpu.memory_space<vmem>>, vector<1x1x128xf32>
    %27 = vector.shape_cast %26 : vector<1x1x128xf32> to vector<1x128xf32>
    %cst_18 = arith.constant 0.000000e+00 : f32
    %28 = vector.broadcast %cst_18 : f32 to vector<1x128xf32>
    %29 = arith.maximumf %27, %28 : vector<1x128xf32>
    %30 = vector.broadcast %cst_18 : f32 to vector<1x128xf32>
    %31 = arith.subf %27, %30 : vector<1x128xf32>
    %32 = arith.cmpf one, %31, %31 : vector<1x128xf32>
    %33 = vector.broadcast %cst_18 : f32 to vector<1x128xf32>
    %34 = arith.addf %27, %33 : vector<1x128xf32>
    %35 = math.absf %31 : vector<1x128xf32>
    %cst_19 = arith.constant 0.000000e+00 : f32
    %36 = vector.broadcast %cst_19 : f32 to vector<1x128xf32>
    %37 = arith.subf %36, %35 : vector<1x128xf32>
    %38 = math.exp %37 : vector<1x128xf32>
    %39 = math.log1p %38 : vector<1x128xf32>
    %40 = arith.addf %29, %39 : vector<1x128xf32>
    %41 = arith.select %32, %34, %40 : vector<1x128xi1>, vector<1x128xf32>
    %c0_20 = arith.constant 0 : index
    %c0_21 = arith.constant 0 : index
    %c0_22 = arith.constant 0 : index
    %42 = vector.load %arg6[%c0_20, %c0_21, %c0_22] : memref<3x1x128xf32, #tpu.memory_space<vmem>>, vector<1x1x128xf32>
    %43 = vector.shape_cast %42 : vector<1x1x128xf32> to vector<1x128xf32>
    %44 = arith.mulf %41, %43 : vector<1x128xf32>
    %45 = arith.addf %25, %44 : vector<1x128xf32>
    %46 = vector.extract_strided_slice %0 {offsets = [0, 0], sizes = [8, 16], strides = [1, 1]} : vector<8x128xf32> to vector<8x16xf32>
    %cst_23 = arith.constant dense<0.000000e+00> : vector<8x128xf32>
    %47 = tpu.matmul %46, %23, %cst_23 {dimension_numbers = #tpu.dot_dimension_numbers<[1], [0], [0], [1], [0, 0, 1, 1], [], []>, precision = #tpu.contract_precision<fp32>} : vector<8x16xf32>, vector<16x128xf32>, vector<8x128xf32> -> vector<8x128xf32>
    %48 = vector.broadcast %45 : vector<1x128xf32> to vector<8x128xf32>
    %49 = arith.addf %47, %48 : vector<8x128xf32>
    %cst_24 = arith.constant 0.000000e+00 : f32
    %50 = vector.broadcast %cst_24 : f32 to vector<8x128xf32>
    %51 = arith.maximumf %49, %50 : vector<8x128xf32>
    %52 = math.log %19 : vector<16x128xf32>
    %cst_25 = arith.constant 2.000000e+00 : f32
    %53 = vector.broadcast %cst_25 : f32 to vector<16x128xf32>
    %54 = arith.mulf %53, %52 : vector<16x128xf32>
    %cst_26 = arith.constant -6.21460819 : f32
    %55 = vector.broadcast %cst_26 : f32 to vector<16x128xf32>
    %56 = arith.subf %55, %54 : vector<16x128xf32>
    %57 = arith.mulf %19, %19 : vector<16x128xf32>
    %58 = arith.mulf %3, %3 : vector<16x128xf32>
    %59 = arith.addf %57, %58 : vector<16x128xf32>
    %cst_27 = arith.constant 125000.5 : f32
    %60 = vector.broadcast %cst_27 : f32 to vector<16x128xf32>
    %61 = arith.mulf %59, %60 : vector<16x128xf32>
    %62 = arith.addf %56, %61 : vector<16x128xf32>
    %cst_28 = arith.constant 1.000000e+00 : f32
    %63 = vector.broadcast %cst_28 : f32 to vector<16x128xf32>
    %64 = arith.subf %62, %63 : vector<16x128xf32>
    %cst_29 = arith.constant 5.000000e-01 : f32
    %65 = vector.broadcast %cst_29 : f32 to vector<16x128xf32>
    %66 = arith.mulf %65, %64 : vector<16x128xf32>
    %67 = tpu.iota {dimensions = array<i32: 0>} : vector<16x128xi32>
    %68 = tpu.iota {dimensions = array<i32: 1>} : vector<16x128xi32>
    %c16_i32 = arith.constant 16 : i32
    %69 = vector.broadcast %c16_i32 : i32 to vector<16x128xi32>
    %70 = arith.cmpi slt, %67, %69 : vector<16x128xi32>
    %c32_i32 = arith.constant 32 : i32
    %71 = vector.broadcast %c32_i32 : i32 to vector<16x128xi32>
    %72 = arith.cmpi slt, %68, %71 : vector<16x128xi32>
    %73 = arith.andi %70, %72 : vector<16x128xi1>
    %cst_30 = arith.constant 0.000000e+00 : f32
    %74 = vector.broadcast %cst_30 : f32 to vector<16x128xf32>
    %75 = arith.select %73, %66, %74 : vector<16x128xi1>, vector<16x128xf32>
    %76 = vector.shape_cast %75 : vector<16x128xf32> to vector<1x16x128xf32>
    %cst_31 = arith.constant dense<0.000000e+00> : vector<1xf32>
    %77 = vector.multi_reduction <add>, %76, %cst_31 [1, 2] : vector<1x16x128xf32> to vector<1xf32>
    %78 = vector.shape_cast %77 : vector<1xf32> to vector<1x1x1xf32>
    %79 = vector.extract %78[0, 0, 0] : f32 from vector<1x1x1xf32>
    %80 = vector.broadcast %79 : f32 to vector<1x1xf32>
    %81 = arith.addf %1, %80 : vector<1x1xf32>
    %82 = math.log %41 : vector<1x128xf32>
    %cst_32 = arith.constant 2.000000e+00 : f32
    %83 = vector.broadcast %cst_32 : f32 to vector<1x128xf32>
    %84 = arith.mulf %83, %82 : vector<1x128xf32>
    %cst_33 = arith.constant -6.21460819 : f32
    %85 = vector.broadcast %cst_33 : f32 to vector<1x128xf32>
    %86 = arith.subf %85, %84 : vector<1x128xf32>
    %87 = arith.mulf %41, %41 : vector<1x128xf32>
    %88 = arith.mulf %25, %25 : vector<1x128xf32>
    %89 = arith.addf %87, %88 : vector<1x128xf32>
    %cst_34 = arith.constant 125000.5 : f32
    %90 = vector.broadcast %cst_34 : f32 to vector<1x128xf32>
    %91 = arith.mulf %89, %90 : vector<1x128xf32>
    %92 = arith.addf %86, %91 : vector<1x128xf32>
    %cst_35 = arith.constant 1.000000e+00 : f32
    %93 = vector.broadcast %cst_35 : f32 to vector<1x128xf32>
    %94 = arith.subf %92, %93 : vector<1x128xf32>
    %cst_36 = arith.constant 5.000000e-01 : f32
    %95 = vector.broadcast %cst_36 : f32 to vector<1x128xf32>
    %96 = arith.mulf %95, %94 : vector<1x128xf32>
    %97 = tpu.iota {dimensions = array<i32: 1>} : vector<1x128xi32>
    %c32_i32_37 = arith.constant 32 : i32
    %98 = vector.broadcast %c32_i32_37 : i32 to vector<1x128xi32>
    %99 = arith.cmpi slt, %97, %98 : vector<1x128xi32>
    %cst_38 = arith.constant 0.000000e+00 : f32
    %100 = vector.broadcast %cst_38 : f32 to vector<1x128xf32>
    %101 = arith.select %99, %96, %100 : vector<1x128xi1>, vector<1x128xf32>
    %102 = vector.shape_cast %101 : vector<1x128xf32> to vector<1x1x128xf32>
    %cst_39 = arith.constant dense<0.000000e+00> : vector<1xf32>
    %103 = vector.multi_reduction <add>, %102, %cst_39 [1, 2] : vector<1x1x128xf32> to vector<1xf32>
    %104 = vector.shape_cast %103 : vector<1xf32> to vector<1x1x1xf32>
    %105 = vector.extract %104[0, 0, 0] : f32 from vector<1x1x1xf32>
    %106 = vector.broadcast %105 : f32 to vector<1x1xf32>
    %107 = arith.addf %81, %106 : vector<1x1xf32>
    %c1 = arith.constant 1 : index
    %c0_40 = arith.constant 0 : index
    %c0_41 = arith.constant 0 : index
    %108 = vector.load %arg1[%c1, %c0_40, %c0_41] : memref<3x128x128xf32, #tpu.memory_space<vmem>>, vector<1x32x128xf32>
    %109 = vector.shape_cast %108 : vector<1x32x128xf32> to vector<32x128xf32>
    %c1_42 = arith.constant 1 : index
    %c0_43 = arith.constant 0 : index
    %c0_44 = arith.constant 0 : index
    %110 = vector.load %arg2[%c1_42, %c0_43, %c0_44] : memref<3x128x128xf32, #tpu.memory_space<vmem>>, vector<1x32x128xf32>
    %111 = vector.shape_cast %110 : vector<1x32x128xf32> to vector<32x128xf32>
    %cst_45 = arith.constant 0.000000e+00 : f32
    %112 = vector.broadcast %cst_45 : f32 to vector<32x128xf32>
    %113 = arith.maximumf %111, %112 : vector<32x128xf32>
    %114 = vector.broadcast %cst_45 : f32 to vector<32x128xf32>
    %115 = arith.subf %111, %114 : vector<32x128xf32>
    %116 = arith.cmpf one, %115, %115 : vector<32x128xf32>
    %117 = vector.broadcast %cst_45 : f32 to vector<32x128xf32>
    %118 = arith.addf %111, %117 : vector<32x128xf32>
    %119 = math.absf %115 : vector<32x128xf32>
    %cst_46 = arith.constant 0.000000e+00 : f32
    %120 = vector.broadcast %cst_46 : f32 to vector<32x128xf32>
    %121 = arith.subf %120, %119 : vector<32x128xf32>
    %122 = math.exp %121 : vector<32x128xf32>
    %123 = math.log1p %122 : vector<32x128xf32>
    %124 = arith.addf %113, %123 : vector<32x128xf32>
    %125 = arith.select %116, %118, %124 : vector<32x128xi1>, vector<32x128xf32>
    %c1_47 = arith.constant 1 : index
    %c0_48 = arith.constant 0 : index
    %c0_49 = arith.constant 0 : index
    %126 = vector.load %arg5[%c1_47, %c0_48, %c0_49] : memref<3x32x128xf32, #tpu.memory_space<vmem>>, vector<1x32x128xf32>
    %127 = vector.shape_cast %126 : vector<1x32x128xf32> to vector<32x128xf32>
    %128 = arith.mulf %125, %127 : vector<32x128xf32>
    %129 = arith.addf %109, %128 : vector<32x128xf32>
    %c1_50 = arith.constant 1 : index
    %c0_51 = arith.constant 0 : index
    %c0_52 = arith.constant 0 : index
    %130 = vector.load %arg3[%c1_50, %c0_51, %c0_52] : memref<3x1x128xf32, #tpu.memory_space<vmem>>, vector<1x1x128xf32>
    %131 = vector.shape_cast %130 : vector<1x1x128xf32> to vector<1x128xf32>
    %c1_53 = arith.constant 1 : index
    %c0_54 = arith.constant 0 : index
    %c0_55 = arith.constant 0 : index
    %132 = vector.load %arg4[%c1_53, %c0_54, %c0_55] : memref<3x1x128xf32, #tpu.memory_space<vmem>>, vector<1x1x128xf32>
    %133 = vector.shape_cast %132 : vector<1x1x128xf32> to vector<1x128xf32>
    %cst_56 = arith.constant 0.000000e+00 : f32
    %134 = vector.broadcast %cst_56 : f32 to vector<1x128xf32>
    %135 = arith.maximumf %133, %134 : vector<1x128xf32>
    %136 = vector.broadcast %cst_56 : f32 to vector<1x128xf32>
    %137 = arith.subf %133, %136 : vector<1x128xf32>
    %138 = arith.cmpf one, %137, %137 : vector<1x128xf32>
    %139 = vector.broadcast %cst_56 : f32 to vector<1x128xf32>
    %140 = arith.addf %133, %139 : vector<1x128xf32>
    %141 = math.absf %137 : vector<1x128xf32>
    %cst_57 = arith.constant 0.000000e+00 : f32
    %142 = vector.broadcast %cst_57 : f32 to vector<1x128xf32>
    %143 = arith.subf %142, %141 : vector<1x128xf32>
    %144 = math.exp %143 : vector<1x128xf32>
    %145 = math.log1p %144 : vector<1x128xf32>
    %146 = arith.addf %135, %145 : vector<1x128xf32>
    %147 = arith.select %138, %140, %146 : vector<1x128xi1>, vector<1x128xf32>
    %c1_58 = arith.constant 1 : index
    %c0_59 = arith.constant 0 : index
    %c0_60 = arith.constant 0 : index
    %148 = vector.load %arg6[%c1_58, %c0_59, %c0_60] : memref<3x1x128xf32, #tpu.memory_space<vmem>>, vector<1x1x128xf32>
    %149 = vector.shape_cast %148 : vector<1x1x128xf32> to vector<1x128xf32>
    %150 = arith.mulf %147, %149 : vector<1x128xf32>
    %151 = arith.addf %131, %150 : vector<1x128xf32>
    %152 = vector.extract_strided_slice %51 {offsets = [0, 0], sizes = [8, 32], strides = [1, 1]} : vector<8x128xf32> to vector<8x32xf32>
    %cst_61 = arith.constant dense<0.000000e+00> : vector<8x128xf32>
    %153 = tpu.matmul %152, %129, %cst_61 {dimension_numbers = #tpu.dot_dimension_numbers<[1], [0], [0], [1], [0, 0, 1, 1], [], []>, precision = #tpu.contract_precision<fp32>} : vector<8x32xf32>, vector<32x128xf32>, vector<8x128xf32> -> vector<8x128xf32>
    %154 = vector.broadcast %151 : vector<1x128xf32> to vector<8x128xf32>
    %155 = arith.addf %153, %154 : vector<8x128xf32>
    %cst_62 = arith.constant 0.000000e+00 : f32
    %156 = vector.broadcast %cst_62 : f32 to vector<8x128xf32>
    %157 = arith.maximumf %155, %156 : vector<8x128xf32>
    %158 = math.log %125 : vector<32x128xf32>
    %cst_63 = arith.constant 2.000000e+00 : f32
    %159 = vector.broadcast %cst_63 : f32 to vector<32x128xf32>
    %160 = arith.mulf %159, %158 : vector<32x128xf32>
    %cst_64 = arith.constant -6.21460819 : f32
    %161 = vector.broadcast %cst_64 : f32 to vector<32x128xf32>
    %162 = arith.subf %161, %160 : vector<32x128xf32>
    %163 = arith.mulf %125, %125 : vector<32x128xf32>
    %164 = arith.mulf %109, %109 : vector<32x128xf32>
    %165 = arith.addf %163, %164 : vector<32x128xf32>
    %cst_65 = arith.constant 125000.5 : f32
    %166 = vector.broadcast %cst_65 : f32 to vector<32x128xf32>
    %167 = arith.mulf %165, %166 : vector<32x128xf32>
    %168 = arith.addf %162, %167 : vector<32x128xf32>
    %cst_66 = arith.constant 1.000000e+00 : f32
    %169 = vector.broadcast %cst_66 : f32 to vector<32x128xf32>
    %170 = arith.subf %168, %169 : vector<32x128xf32>
    %cst_67 = arith.constant 5.000000e-01 : f32
    %171 = vector.broadcast %cst_67 : f32 to vector<32x128xf32>
    %172 = arith.mulf %171, %170 : vector<32x128xf32>
    %173 = tpu.iota {dimensions = array<i32: 0>} : vector<32x128xi32>
    %174 = tpu.iota {dimensions = array<i32: 1>} : vector<32x128xi32>
    %c32_i32_68 = arith.constant 32 : i32
    %175 = vector.broadcast %c32_i32_68 : i32 to vector<32x128xi32>
    %176 = arith.cmpi slt, %173, %175 : vector<32x128xi32>
    %c32_i32_69 = arith.constant 32 : i32
    %177 = vector.broadcast %c32_i32_69 : i32 to vector<32x128xi32>
    %178 = arith.cmpi slt, %174, %177 : vector<32x128xi32>
    %179 = arith.andi %176, %178 : vector<32x128xi1>
    %cst_70 = arith.constant 0.000000e+00 : f32
    %180 = vector.broadcast %cst_70 : f32 to vector<32x128xf32>
    %181 = arith.select %179, %172, %180 : vector<32x128xi1>, vector<32x128xf32>
    %182 = vector.shape_cast %181 : vector<32x128xf32> to vector<1x32x128xf32>
    %cst_71 = arith.constant dense<0.000000e+00> : vector<1xf32>
    %183 = vector.multi_reduction <add>, %182, %cst_71 [1, 2] : vector<1x32x128xf32> to vector<1xf32>
    %184 = vector.shape_cast %183 : vector<1xf32> to vector<1x1x1xf32>
    %185 = vector.extract %184[0, 0, 0] : f32 from vector<1x1x1xf32>
    %186 = vector.broadcast %185 : f32 to vector<1x1xf32>
    %187 = arith.addf %107, %186 : vector<1x1xf32>
    %188 = math.log %147 : vector<1x128xf32>
    %cst_72 = arith.constant 2.000000e+00 : f32
    %189 = vector.broadcast %cst_72 : f32 to vector<1x128xf32>
    %190 = arith.mulf %189, %188 : vector<1x128xf32>
    %cst_73 = arith.constant -6.21460819 : f32
    %191 = vector.broadcast %cst_73 : f32 to vector<1x128xf32>
    %192 = arith.subf %191, %190 : vector<1x128xf32>
    %193 = arith.mulf %147, %147 : vector<1x128xf32>
    %194 = arith.mulf %131, %131 : vector<1x128xf32>
    %195 = arith.addf %193, %194 : vector<1x128xf32>
    %cst_74 = arith.constant 125000.5 : f32
    %196 = vector.broadcast %cst_74 : f32 to vector<1x128xf32>
    %197 = arith.mulf %195, %196 : vector<1x128xf32>
    %198 = arith.addf %192, %197 : vector<1x128xf32>
    %cst_75 = arith.constant 1.000000e+00 : f32
    %199 = vector.broadcast %cst_75 : f32 to vector<1x128xf32>
    %200 = arith.subf %198, %199 : vector<1x128xf32>
    %cst_76 = arith.constant 5.000000e-01 : f32
    %201 = vector.broadcast %cst_76 : f32 to vector<1x128xf32>
    %202 = arith.mulf %201, %200 : vector<1x128xf32>
    %203 = tpu.iota {dimensions = array<i32: 1>} : vector<1x128xi32>
    %c32_i32_77 = arith.constant 32 : i32
    %204 = vector.broadcast %c32_i32_77 : i32 to vector<1x128xi32>
    %205 = arith.cmpi slt, %203, %204 : vector<1x128xi32>
    %cst_78 = arith.constant 0.000000e+00 : f32
    %206 = vector.broadcast %cst_78 : f32 to vector<1x128xf32>
    %207 = arith.select %205, %202, %206 : vector<1x128xi1>, vector<1x128xf32>
    %208 = vector.shape_cast %207 : vector<1x128xf32> to vector<1x1x128xf32>
    %cst_79 = arith.constant dense<0.000000e+00> : vector<1xf32>
    %209 = vector.multi_reduction <add>, %208, %cst_79 [1, 2] : vector<1x1x128xf32> to vector<1xf32>
    %210 = vector.shape_cast %209 : vector<1xf32> to vector<1x1x1xf32>
    %211 = vector.extract %210[0, 0, 0] : f32 from vector<1x1x1xf32>
    %212 = vector.broadcast %211 : f32 to vector<1x1xf32>
    %213 = arith.addf %187, %212 : vector<1x1xf32>
    %c2 = arith.constant 2 : index
    %c0_80 = arith.constant 0 : index
    %c0_81 = arith.constant 0 : index
    %214 = vector.load %arg1[%c2, %c0_80, %c0_81] : memref<3x128x128xf32, #tpu.memory_space<vmem>>, vector<1x32x128xf32>
    %215 = vector.shape_cast %214 : vector<1x32x128xf32> to vector<32x128xf32>
    %c2_82 = arith.constant 2 : index
    %c0_83 = arith.constant 0 : index
    %c0_84 = arith.constant 0 : index
    %216 = vector.load %arg2[%c2_82, %c0_83, %c0_84] : memref<3x128x128xf32, #tpu.memory_space<vmem>>, vector<1x32x128xf32>
    %217 = vector.shape_cast %216 : vector<1x32x128xf32> to vector<32x128xf32>
    %cst_85 = arith.constant 0.000000e+00 : f32
    %218 = vector.broadcast %cst_85 : f32 to vector<32x128xf32>
    %219 = arith.maximumf %217, %218 : vector<32x128xf32>
    %220 = vector.broadcast %cst_85 : f32 to vector<32x128xf32>
    %221 = arith.subf %217, %220 : vector<32x128xf32>
    %222 = arith.cmpf one, %221, %221 : vector<32x128xf32>
    %223 = vector.broadcast %cst_85 : f32 to vector<32x128xf32>
    %224 = arith.addf %217, %223 : vector<32x128xf32>
    %225 = math.absf %221 : vector<32x128xf32>
    %cst_86 = arith.constant 0.000000e+00 : f32
    %226 = vector.broadcast %cst_86 : f32 to vector<32x128xf32>
    %227 = arith.subf %226, %225 : vector<32x128xf32>
    %228 = math.exp %227 : vector<32x128xf32>
    %229 = math.log1p %228 : vector<32x128xf32>
    %230 = arith.addf %219, %229 : vector<32x128xf32>
    %231 = arith.select %222, %224, %230 : vector<32x128xi1>, vector<32x128xf32>
    %c2_87 = arith.constant 2 : index
    %c0_88 = arith.constant 0 : index
    %c0_89 = arith.constant 0 : index
    %232 = vector.load %arg5[%c2_87, %c0_88, %c0_89] : memref<3x32x128xf32, #tpu.memory_space<vmem>>, vector<1x32x128xf32>
    %233 = vector.shape_cast %232 : vector<1x32x128xf32> to vector<32x128xf32>
    %234 = arith.mulf %231, %233 : vector<32x128xf32>
    %235 = arith.addf %215, %234 : vector<32x128xf32>
    %c2_90 = arith.constant 2 : index
    %c0_91 = arith.constant 0 : index
    %c0_92 = arith.constant 0 : index
    %236 = vector.load %arg3[%c2_90, %c0_91, %c0_92] : memref<3x1x128xf32, #tpu.memory_space<vmem>>, vector<1x1x128xf32>
    %237 = vector.shape_cast %236 : vector<1x1x128xf32> to vector<1x128xf32>
    %c2_93 = arith.constant 2 : index
    %c0_94 = arith.constant 0 : index
    %c0_95 = arith.constant 0 : index
    %238 = vector.load %arg4[%c2_93, %c0_94, %c0_95] : memref<3x1x128xf32, #tpu.memory_space<vmem>>, vector<1x1x128xf32>
    %239 = vector.shape_cast %238 : vector<1x1x128xf32> to vector<1x128xf32>
    %cst_96 = arith.constant 0.000000e+00 : f32
    %240 = vector.broadcast %cst_96 : f32 to vector<1x128xf32>
    %241 = arith.maximumf %239, %240 : vector<1x128xf32>
    %242 = vector.broadcast %cst_96 : f32 to vector<1x128xf32>
    %243 = arith.subf %239, %242 : vector<1x128xf32>
    %244 = arith.cmpf one, %243, %243 : vector<1x128xf32>
    %245 = vector.broadcast %cst_96 : f32 to vector<1x128xf32>
    %246 = arith.addf %239, %245 : vector<1x128xf32>
    %247 = math.absf %243 : vector<1x128xf32>
    %cst_97 = arith.constant 0.000000e+00 : f32
    %248 = vector.broadcast %cst_97 : f32 to vector<1x128xf32>
    %249 = arith.subf %248, %247 : vector<1x128xf32>
    %250 = math.exp %249 : vector<1x128xf32>
    %251 = math.log1p %250 : vector<1x128xf32>
    %252 = arith.addf %241, %251 : vector<1x128xf32>
    %253 = arith.select %244, %246, %252 : vector<1x128xi1>, vector<1x128xf32>
    %c2_98 = arith.constant 2 : index
    %c0_99 = arith.constant 0 : index
    %c0_100 = arith.constant 0 : index
    %254 = vector.load %arg6[%c2_98, %c0_99, %c0_100] : memref<3x1x128xf32, #tpu.memory_space<vmem>>, vector<1x1x128xf32>
    %255 = vector.shape_cast %254 : vector<1x1x128xf32> to vector<1x128xf32>
    %256 = arith.mulf %253, %255 : vector<1x128xf32>
    %257 = arith.addf %237, %256 : vector<1x128xf32>
    %258 = vector.extract_strided_slice %157 {offsets = [0, 0], sizes = [8, 32], strides = [1, 1]} : vector<8x128xf32> to vector<8x32xf32>
    %cst_101 = arith.constant dense<0.000000e+00> : vector<8x128xf32>
    %259 = tpu.matmul %258, %235, %cst_101 {dimension_numbers = #tpu.dot_dimension_numbers<[1], [0], [0], [1], [0, 0, 1, 1], [], []>, precision = #tpu.contract_precision<fp32>} : vector<8x32xf32>, vector<32x128xf32>, vector<8x128xf32> -> vector<8x128xf32>
    %260 = vector.broadcast %257 : vector<1x128xf32> to vector<8x128xf32>
    %261 = arith.addf %259, %260 : vector<8x128xf32>
    %cst_102 = arith.constant 0.000000e+00 : f32
    %262 = vector.broadcast %cst_102 : f32 to vector<8x128xf32>
    %263 = arith.maximumf %261, %262 : vector<8x128xf32>
    %264 = math.log %231 : vector<32x128xf32>
    %cst_103 = arith.constant 2.000000e+00 : f32
    %265 = vector.broadcast %cst_103 : f32 to vector<32x128xf32>
    %266 = arith.mulf %265, %264 : vector<32x128xf32>
    %cst_104 = arith.constant -6.21460819 : f32
    %267 = vector.broadcast %cst_104 : f32 to vector<32x128xf32>
    %268 = arith.subf %267, %266 : vector<32x128xf32>
    %269 = arith.mulf %231, %231 : vector<32x128xf32>
    %270 = arith.mulf %215, %215 : vector<32x128xf32>
    %271 = arith.addf %269, %270 : vector<32x128xf32>
    %cst_105 = arith.constant 125000.5 : f32
    %272 = vector.broadcast %cst_105 : f32 to vector<32x128xf32>
    %273 = arith.mulf %271, %272 : vector<32x128xf32>
    %274 = arith.addf %268, %273 : vector<32x128xf32>
    %cst_106 = arith.constant 1.000000e+00 : f32
    %275 = vector.broadcast %cst_106 : f32 to vector<32x128xf32>
    %276 = arith.subf %274, %275 : vector<32x128xf32>
    %cst_107 = arith.constant 5.000000e-01 : f32
    %277 = vector.broadcast %cst_107 : f32 to vector<32x128xf32>
    %278 = arith.mulf %277, %276 : vector<32x128xf32>
    %279 = tpu.iota {dimensions = array<i32: 0>} : vector<32x128xi32>
    %280 = tpu.iota {dimensions = array<i32: 1>} : vector<32x128xi32>
    %c32_i32_108 = arith.constant 32 : i32
    %281 = vector.broadcast %c32_i32_108 : i32 to vector<32x128xi32>
    %282 = arith.cmpi slt, %279, %281 : vector<32x128xi32>
    %c8_i32 = arith.constant 8 : i32
    %283 = vector.broadcast %c8_i32 : i32 to vector<32x128xi32>
    %284 = arith.cmpi slt, %280, %283 : vector<32x128xi32>
    %285 = arith.andi %282, %284 : vector<32x128xi1>
    %cst_109 = arith.constant 0.000000e+00 : f32
    %286 = vector.broadcast %cst_109 : f32 to vector<32x128xf32>
    %287 = arith.select %285, %278, %286 : vector<32x128xi1>, vector<32x128xf32>
    %288 = vector.shape_cast %287 : vector<32x128xf32> to vector<1x32x128xf32>
    %cst_110 = arith.constant dense<0.000000e+00> : vector<1xf32>
    %289 = vector.multi_reduction <add>, %288, %cst_110 [1, 2] : vector<1x32x128xf32> to vector<1xf32>
    %290 = vector.shape_cast %289 : vector<1xf32> to vector<1x1x1xf32>
    %291 = vector.extract %290[0, 0, 0] : f32 from vector<1x1x1xf32>
    %292 = vector.broadcast %291 : f32 to vector<1x1xf32>
    %293 = arith.addf %213, %292 : vector<1x1xf32>
    %294 = math.log %253 : vector<1x128xf32>
    %cst_111 = arith.constant 2.000000e+00 : f32
    %295 = vector.broadcast %cst_111 : f32 to vector<1x128xf32>
    %296 = arith.mulf %295, %294 : vector<1x128xf32>
    %cst_112 = arith.constant -6.21460819 : f32
    %297 = vector.broadcast %cst_112 : f32 to vector<1x128xf32>
    %298 = arith.subf %297, %296 : vector<1x128xf32>
    %299 = arith.mulf %253, %253 : vector<1x128xf32>
    %300 = arith.mulf %237, %237 : vector<1x128xf32>
    %301 = arith.addf %299, %300 : vector<1x128xf32>
    %cst_113 = arith.constant 125000.5 : f32
    %302 = vector.broadcast %cst_113 : f32 to vector<1x128xf32>
    %303 = arith.mulf %301, %302 : vector<1x128xf32>
    %304 = arith.addf %298, %303 : vector<1x128xf32>
    %cst_114 = arith.constant 1.000000e+00 : f32
    %305 = vector.broadcast %cst_114 : f32 to vector<1x128xf32>
    %306 = arith.subf %304, %305 : vector<1x128xf32>
    %cst_115 = arith.constant 5.000000e-01 : f32
    %307 = vector.broadcast %cst_115 : f32 to vector<1x128xf32>
    %308 = arith.mulf %307, %306 : vector<1x128xf32>
    %309 = tpu.iota {dimensions = array<i32: 1>} : vector<1x128xi32>
    %c8_i32_116 = arith.constant 8 : i32
    %310 = vector.broadcast %c8_i32_116 : i32 to vector<1x128xi32>
    %311 = arith.cmpi slt, %309, %310 : vector<1x128xi32>
    %cst_117 = arith.constant 0.000000e+00 : f32
    %312 = vector.broadcast %cst_117 : f32 to vector<1x128xf32>
    %313 = arith.select %311, %308, %312 : vector<1x128xi1>, vector<1x128xf32>
    %314 = vector.shape_cast %313 : vector<1x128xf32> to vector<1x1x128xf32>
    %cst_118 = arith.constant dense<0.000000e+00> : vector<1xf32>
    %315 = vector.multi_reduction <add>, %314, %cst_118 [1, 2] : vector<1x1x128xf32> to vector<1xf32>
    %316 = vector.shape_cast %315 : vector<1xf32> to vector<1x1x1xf32>
    %317 = vector.extract %316[0, 0, 0] : f32 from vector<1x1x1xf32>
    %318 = vector.broadcast %317 : f32 to vector<1x1xf32>
    %319 = arith.addf %293, %318 : vector<1x1xf32>
    %c0_119 = arith.constant 0 : index
    %c0_120 = arith.constant 0 : index
    %320 = vector.load %arg7[%c0_119, %c0_120] : memref<8x128xf32, #tpu.memory_space<vmem>>, vector<8x128xf32>
    tpu.vector_store %arg7[%c0_119, %c0_120], %263 {strides = array<i32>} : memref<8x128xf32, #tpu.memory_space<vmem>>, vector<8x128xf32>,
    %c0_121 = arith.constant 0 : index
    %c0_122 = arith.constant 0 : index
    %321 = vector.load %arg8[%c0_121, %c0_122] : memref<1x1xf32, #tpu.memory_space<vmem>>, vector<1x1xf32>
    tpu.vector_store %arg8[%c0_121, %c0_122], %319 {strides = array<i32>} : memref<1x1xf32, #tpu.memory_space<vmem>>, vector<1x1xf32>,
    return
  }
}

</mosaic_0001>

<bundles_post_ra>
// kernel: tpu_custom_call.1
= control target key start
LH: loop header
LB: loop body
LE: loop exit
PB: predicated region body
PF: predicated region fallthrough
CT: control target
= control target key end

     0   :  { %14 = vsyncpa [#allocation3], 0  ;;  %s2023_s0 = inlined_call_operand.hbm [shape: f32[8,128], index: 0, kind: input, shape index: {}]   ;;  %s2024_s1 = inlined_call_operand.hbm [shape: f32[3,128,128], index: 1, kind: input, shape index: {}]   ;;  %s2025_s2 = inlined_call_operand.hbm [shape: f32[3,128,128], index: 2, kind: input, shape index: {}]   ;;  %s2026_s3 = inlined_call_operand.hbm [shape: f32[3,1,128], index: 3, kind: input, shape index: {}]   ;;  %s2027_s4 = inlined_call_operand.vmem [shape: f32[3,1,128], index: 4, kind: input, shape index: {}]   ;;  %s2028_s5 = inlined_call_operand.hbm [shape: f32[3,32,128], index: 5, kind: input, shape index: {}]   ;;  %s2029_s6 = inlined_call_operand.hbm [shape: f32[3,1,128], index: 6, kind: input, shape index: {}]   ;;  %s2030_s7 = inlined_call_operand.hbm [shape: f32[8,128], index: 7, kind: output, shape index: {0}]   ;;  %s2031_s8 = inlined_call_operand.hbm [shape: f32[1,1], index: 8, kind: output, shape index: {1}]  }
   0x1   :  { %15 = vsyncpa [#allocation6], 0 }
   0x2   :  { %16 = vsyncpa [#allocation9], 0 }
   0x3   :  { %17 = vsyncpa [#allocation12], 0 }
   0x4   :  { %18 = vsyncpa [#allocation4], 0  ;;  %s35_s29 = sshll.u32 %s2024_s1, 4  ;;  %s36_s29 = int_to_ptr.hbm [resolvable:$true] %s35_s29 }
   0x5   :  { %19 = vsyncpa [#allocation15], 0  ;;  %s1604_s30 = smov [#allocation5]   ;;  %s61_s12 = sshll.u32 %s2026_s3, 4  ;;  %s62_s12 = int_to_ptr.hbm [resolvable:$true] %s61_s12 }
   0x6   :  { %s37_s9 = sshll.u32 %s1604_s30, 4  ;;  %s1605_s13 = smov 128   ;;  %s38_s9 = int_to_ptr.vmem [resolvable:$true] %s37_s9 }
   0x7   :  { %s1606_s14 = smov 8   ;;  %s1607_s15 = smov [#allocation8]  }
   0x8   :  { %43 = dma.hbm_to_vmem [thread:$0]  %s36_s29, 6144, %s38_s9, [#allocation6], %s1605_s13, %s1605_s13, %s1606_s14  }
   0x9   :  { %s63_s16 = sshll.u32 %s1607_s15, 4  ;;  %s1608_s1 = smov 16   ;;  %s64_s16 = int_to_ptr.vmem [resolvable:$true] %s63_s16 }
   0xa   :  { %s1609_s17 = smov 1   ;;  %s25_s20 = sshll.u32 %s2023_s0, 4  ;;  %s26_s20 = int_to_ptr.hbm [resolvable:$true] %s25_s20 }
   0xb   :  { %69 = dma.hbm_to_vmem [thread:$0]  %s62_s12, 48, %s64_s16, [#allocation9], %s1608_s1, %s1608_s1, %s1609_s17  }
   0xc   :  { %s1610_s21 = smov [#allocation2]   ;;  %s48_s24 = sshll.u32 %s2025_s2, 4  ;;  %s49_s24 = int_to_ptr.hbm [resolvable:$true] %s48_s24 }
   0xd   :  { %s27_s3 = sshll.u32 %s1610_s21, 4  ;;  %s1611_s25 = smov [#allocation7]   ;;  %s28_s3 = int_to_ptr.vmem [resolvable:$true] %s27_s3 }
   0xe   :  { %30 = dma.hbm_to_vmem [thread:$0]  %s26_s20, 128, %s28_s3, [#allocation3]  }
   0xf   :  { %s50_s26 = sshll.u32 %s1611_s25, 4  ;;  %s76_s29 = sshll.u32 %s2028_s5, 4  ;;  %s51_s26 = int_to_ptr.vmem [resolvable:$true] %s50_s26  ;;  %s77_s29 = int_to_ptr.hbm [resolvable:$true] %s76_s29 }
  0x10   :  { %56 = dma.hbm_to_vmem [thread:$0]  %s49_s24, 6144, %s51_s26, [#allocation6], %s1605_s13, %s1605_s13, %s1606_s14  }
  0x11   :  { %s89_s9 = sshll.u32 %s2029_s6, 4  ;;  %s1612_s10 = smov [#allocation10]   ;;  %s90_s9 = int_to_ptr.hbm [resolvable:$true] %s89_s9 }
  0x12   :  { %s78_s2 = sshll.u32 %s1612_s10, 4  ;;  %s1613_s11 = smov [#allocation11]   ;;  %s79_s2 = int_to_ptr.vmem [resolvable:$true] %s78_s2 }
  0x13   :  { %84 = dma.hbm_to_vmem [thread:$0]  %s77_s29, 1536, %s79_s2, [#allocation9], %s1605_s13, %s1605_s13, %s1606_s14  }
  0x14   :  { %s91_s5 = sshll.u32 %s1613_s11, 4  ;;  %s92_s5 = int_to_ptr.vmem [resolvable:$true] %s91_s5 }
  0x15   :  { %97 = dma.hbm_to_vmem [thread:$0]  %s90_s9, 48, %s92_s5, [#allocation12], %s1608_s1, %s1608_s1, %s1609_s17  }
  0x16   :  { %1592 = dma.done.wait [#allocation3], 128  }
  0x17   :  { %1593 = vsyncadd [#allocation3], 4294967168 }
  0x18   :  { %1594 = dma.done.wait [#allocation6], 12288  }
  0x19   :  { %1595 = vsyncadd [#allocation6], 4294955008 }
  0x1a   :  { %1596 = dma.done.wait [#allocation9], 1584  }
  0x1b   :  { %1597 = vsyncadd [#allocation9], 4294965712 }
  0x1c   :  { %1598 = dma.done.wait [#allocation12], 48  }
  0x1d   :  { %1599 = vsyncadd [#allocation12], 4294967248  ;;  %v126_v0 = vld [vmem:[#allocation7 + $0x8] sm:$0xff]  ;;  %v125_v2 = vld [vmem:[#allocation7] sm:$0xff]  ;;  %vm195_vm0 = vcmask 130048   ;;  %vm554_vm15 = vcmask 261120  }
  0x1e   :  { %v134_v1 = vand.u32 2147483647, %v126_v0  ;;  %v133_v3 = vand.u32 2147483647, %v125_v2  ;;  %v122_v8 = vld [vmem:[#allocation2] sm:$0xff]  ;;  %v128_v23 = vmax.f32 %v126_v0, 0.0  ;;  %vm130_vm3 = vcmp.ne.f32.partialorder %v126_v0, %v126_v0 }
  0x1f   :  { %v197_v15 = vsel %vm195_vm0, %v122_v8, 0  ;;  %v127_v28 = vmax.f32 %v125_v2, 0.0  ;;  %v164_v32 = vld [vmem:[#allocation10 + $0x8] sm:$0xff]  ;;  %vm129_vm4 = vcmp.ne.f32.partialorder %v125_v2, %v125_v2  ;;  %v163_v36 = vld [vmem:[#allocation10] sm:$0xff]  ;;  %v1703_v57 = vld [vmem:[%s2027_s4] sm:$0x1] }
  0x20   :  { %v136_v4 = vsub.f32 0.0, %v134_v1  ;;  %v135_v5 = vsub.f32 0.0, %v133_v3  ;;  %v217_v19 = vand.u32 4294901760, %v197_v15  ;;  %v1688_v37 = vld [vmem:[#allocation5 + $0x8] sm:$0xff]  ;;  %v1693_v40 = vld [vmem:[#allocation5] sm:$0xff]  ;;  %v1706_v59 = vld [vmem:[#allocation7 + $0x98] sm:$0xff]  ;;  %vm172_vm14 = vcmp.ne.f32.partialorder %v1703_v57, %v1703_v57 }
  0x21   :  { %v174_v58 = vand.u32 2147483647, %v1703_v57  ;;  %v455_v60 = vand.u32 2147483647, %v1706_v59  ;;  %v1709_v61 = vld [vmem:[#allocation7 + $0x90] sm:$0xff]  ;;  %v1712_v1 = vld [vmem:[#allocation7 + $0x88] sm:$0xff]  ;;  %vm447_vm7 = vcmp.ne.f32.partialorder %v1706_v59, %v1706_v59 }
  0x22   :  { %v139_v6 = vmul.f32 1.442695, %v136_v4  ;;  %v137_v7 = vmul.f32 1.442695, %v135_v5  ;;  %v218_v25 = vsub.f32 %v197_v15, %v217_v19  ;;  %v454_v63 = vand.u32 2147483647, %v1709_v61 }
  0x23   :  { %v459_v62 = vsub.f32 0.0, %v455_v60  ;;  %v453_v4 = vand.u32 2147483647, %v1712_v1  ;;  %v1715_v5 = vld [vmem:[#allocation7 + $0x80] sm:$0xff]  ;;  %vm446_vm8 = vcmp.ne.f32.partialorder %v1709_v61, %v1709_v61  ;;  %vm445_vm10 = vcmp.ne.f32.partialorder %v1712_v1, %v1712_v1  ;;  %s1614_s20 = smov [#allocation14]   ;;  %s1265_s23 = sshll.u32 %s2031_s8, 4  ;;  %s1266_s23 = int_to_ptr.hbm [resolvable:$true] %s1265_s23 }
  0x24   :  { %1322 = vpow2.f32 %v139_v6  ;;  %v219_v34 = vand.u32 4294901760, %v218_v25  ;;  %v458_v3 = vsub.f32 0.0, %v454_v63  ;;  %v452_v8 = vand.u32 2147483647, %v1715_v5  ;;  %s1263_s21 = sshll.u32 %s1614_s20, 4  ;;  %s1615_s8 = smov [#allocation13]   ;;  %s1264_s21 = int_to_ptr.vmem [resolvable:$true] %s1263_s21 }
  0x25   :  { %1324 = vpow2.f32 %v137_v7  ;;  %v457_v7 = vsub.f32 0.0, %v453_v4  ;;  %vm444_vm12 = vcmp.ne.f32.partialorder %v1715_v5, %v1715_v5  ;;  %s1252_s25 = sshll.u32 %s1615_s8, 4  ;;  %s1254_s28 = sshll.u32 %s2030_s7, 4  ;;  %s1253_s25 = int_to_ptr.vmem [resolvable:$true] %s1252_s25  ;;  %s1255_s28 = int_to_ptr.hbm [resolvable:$true] %s1254_s28 }
  0x26   :  { %v220_v43 = vsub.f32 %v218_v25, %v219_v34  ;;  %v464_v6 = vmul.f32 1.442695, %v458_v3 }
  0x28   :  { %v221_v48 = vand.u32 4294901760, %v220_v43 }
  0x2a   :  { %v1323_v9 = vpop.eup %1322 }
  0x2b   :  { %v1325_v10 = vpop.eup %1324  ;;  %v150_v11 = vadd.f32 1.0, %v1323_v9  ;;  %v153_v12 = vmul.f32 -0.5, %v1323_v9  ;;  %v156_v17 = vand.u32 2147483647, %v1323_v9 }
  0x2c   :  { %v141_v13 = vadd.f32 1.0, %v1325_v10  ;;  %v144_v14 = vmul.f32 -0.5, %v1325_v10  ;;  %v147_v20 = vand.u32 2147483647, %v1325_v10 }
  0x2d   :  { %1326 = vlog2.f32 %v150_v11  ;;  %v154_v16 = vadd.f32 1.0, %v153_v12  ;;  %vm157_vm1 = vcmp.lt.f32.partialorder %v156_v17, 0.0004427343  ;;  %v456_v11 = vsub.f32 0.0, %v452_v8  ;;  %v514_v8 = vld [vmem:[#allocation10 + $0x28] sm:$0xff] }
  0x2e   :  { %1328 = vlog2.f32 %v141_v13  ;;  %v145_v18 = vadd.f32 1.0, %v144_v14  ;;  %vm148_vm2 = vcmp.lt.f32.partialorder %v147_v20, 0.0004427343 }
  0x2f   :  { %v155_v21 = vmul.f32 %v1323_v9, %v154_v16  ;;  %v460_v12 = vmul.f32 1.442695, %v456_v11 }
  0x30   :  { %v146_v24 = vmul.f32 %v1325_v10, %v145_v18  ;;  %v462_v10 = vmul.f32 1.442695, %v457_v7  ;;  %v1746_v7 = vld [vmem:[#allocation5 + $0x90] sm:$0xff] }
  0x33   :  { %v1327_v22 = vpop.eup %1326 }
  0x34   :  { %v1329_v26 = vpop.eup %1328  ;;  %v152_v27 = vmul.f32 0.6931472, %v1327_v22 }
  0x35   :  { %v143_v29 = vmul.f32 0.6931472, %v1329_v26 }
  0x36   :  { %v158_v30 = vsel %vm157_vm1, %v155_v21, %v152_v27 }
  0x37   :  { %v160_v31 = vadd.f32 %v158_v30, %v128_v23  ;;  %v149_v33 = vsel %vm148_vm2, %v146_v24, %v143_v29 }
  0x38   :  { %v159_v35 = vadd.f32 %v149_v33, %v127_v28 }
  0x39   :  { %v1690_v38 = vsel %vm130_vm3, %v126_v0, %v160_v31  ;;  %v175_v0 = vsub.f32 0.0, %v174_v58  ;;  %v1736_v58 = vld [vmem:[#allocation5 + $0x98] sm:$0xff] }
  0x3a   :  { %v166_v39 = vmul.f32 %v164_v32, %v1690_v38  ;;  %v1695_v41 = vsel %vm129_vm4, %v125_v2, %v159_v35  ;;  %v466_v2 = vmul.f32 1.442695, %v459_v62  ;;  %v515_v62 = vld [vmem:[#allocation10 + $0x30] sm:$0xff] }
  0x3b   :  { %v165_v42 = vmul.f32 %v163_v36, %v1695_v41  ;;  %v176_v9 = vmul.f32 1.442695, %v175_v0 }
  0x3c   :  { %v168_v44 = vadd.f32 %v166_v39, %v1688_v37  ;;  %1330 = vpow2.f32 %v466_v2 }
  0x3d   :  { %v167_v45 = vadd.f32 %v165_v42, %v1693_v40  ;;  %1332 = vpow2.f32 %v464_v6 }
  0x3e   :  { %v213_v46 = vand.u32 4294901760, %v168_v44  ;;  %1334 = vpow2.f32 %v462_v10 }
  0x3f   :  { %v215_v47 = vand.u32 4294901760, %v167_v45  ;;  %1336 = vpow2.f32 %v176_v9 }
  0x40   :  { %v241_v49 = vsub.f32 %v168_v44, %v213_v46  ;;  %214 = vmatpush.msra.mxu0 %v213_v46  ;;  %298 = vmatpush.msra.mxu3 %v213_v46  ;;  %1338 = vpow2.f32 %v460_v12 }
  0x41   :  { %v247_v50 = vsub.f32 %v167_v45, %v215_v47 }
  0x42   :  { %273 = vmatpush.msra.mxu2 %v241_v49  ;;  %216 = vmatpush.msra.mxu0 %v215_v47  ;;  %v242_v51 = vand.u32 4294901760, %v241_v49  ;;  %v1331_v13 = vpop.eup %1330 }
  0x43   :  { %300 = vmatpush.msra.mxu3 %v215_v47  ;;  %222 = vmatmul.f32.vlgmr.msra.gmra.mxu0 %v221_v48  ;;  %v248_v52 = vand.u32 4294901760, %v247_v50  ;;  %v495_v14 = vadd.f32 1.0, %v1331_v13  ;;  %v1333_v15 = vpop.eup %1332  ;;  %v498_v21 = vmul.f32 -0.5, %v1331_v13  ;;  %v501_v27 = vand.u32 2147483647, %v1331_v13 }
  0x44   :  { %276 = vmatpush.msra.mxu2 %v247_v50  ;;  %v243_v53 = vsub.f32 %v241_v49, %v242_v51  ;;  %304 = vmatmul.f32.vlgmr.msra.gmra.mxu3 %v219_v34  ;;  %v486_v16 = vadd.f32 1.0, %v1333_v15  ;;  %v1335_v17 = vpop.eup %1334  ;;  %v489_v24 = vmul.f32 -0.5, %v1333_v15  ;;  %v443_v34 = vmax.f32 %v1706_v59, 0.0 }
  0x45   :  { %279 = vmatmul.f32.vlgmr.msra.gmra.mxu2 %v218_v25  ;;  %325 = vmatpush.msrb.mxu0 %v242_v51  ;;  %v249_v54 = vsub.f32 %v247_v50, %v248_v52  ;;  %1340 = vlog2.f32 %v495_v14  ;;  %v1718_v18 = vpop.eup %1336  ;;  %v499_v23 = vadd.f32 1.0, %v498_v21  ;;  %v480_v31 = vmul.f32 -0.5, %v1335_v17 }
  0x46   :  { %v244_v55 = vand.u32 4294901760, %v243_v53  ;;  %1342 = vlog2.f32 %v486_v16  ;;  %v1720_v20 = vpop.eup %1338  ;;  %v178_v26 = vadd.f32 1.0, %v1718_v18  ;;  %v490_v30 = vadd.f32 1.0, %v489_v24  ;;  %v1757_v16 = vld [vmem:[#allocation5 + $0x88] sm:$0xff] }
  0x47   :  { %v250_v56 = vand.u32 4294901760, %v249_v54  ;;  %329 = vmatpush.msrb.mxu0 %v248_v52  ;;  %v468_v22 = vadd.f32 1.0, %v1720_v20  ;;  %v500_v29 = vmul.f32 %v1331_v13, %v499_v23  ;;  %v181_v33 = vmul.f32 -0.5, %v1718_v18  ;;  %v516_v52 = vld [vmem:[#allocation10 + $0x38] sm:$0xff] }
  0x48   :  { %245 = vmatpush.msra.mxu1 %v244_v55  ;;  %vm502_vm5 = vcmp.lt.f32.partialorder %v501_v27, 0.0004427343  ;;  %v492_v35 = vand.u32 2147483647, %v1333_v15  ;;  %v491_v42 = vmul.f32 %v1333_v15, %v490_v30  ;;  %v481_v43 = vadd.f32 1.0, %v480_v31 }
  0x49   :  { %v441_v54 = vmax.f32 %v1712_v1, 0.0  ;;  %v471_v0 = vmul.f32 -0.5, %v1720_v20  ;;  %v182_v6 = vadd.f32 1.0, %v181_v33  ;;  %v440_v14 = vmax.f32 %v1715_v5, 0.0 }
  0x4a   :  { %251 = vmatpush.msra.mxu1 %v250_v56  ;;  %vm493_vm6 = vcmp.lt.f32.partialorder %v492_v35, 0.0004427343  ;;  %v482_v55 = vmul.f32 %v1335_v17, %v481_v43  ;;  %v184_v15 = vand.u32 2147483647, %v1718_v18 }
  0x4b   :  { %253 = vmatmul.f32.vlgmr.msra.gmra.mxu1 %v217_v19  ;;  %331 = vmatmul.f32.vlgmr.msrb.gmra.mxu0 %v217_v19  ;;  %v1341_v25 = vpop.eup %1340  ;;  %v472_v9 = vadd.f32 1.0, %v471_v0 }
  0x4c   :  { %350 = vmatpush.msrb.mxu1 %v213_v46  ;;  %v497_v28 = vmul.f32 0.6931472, %v1341_v25  ;;  %v1343_v32 = vpop.eup %1342  ;;  %v442_v46 = vmax.f32 %v1709_v61, 0.0  ;;  %vm1768_vm13 = vcmp.lt.f32.partialorder %v184_v15, 0.0004427343 }
  0x4d   :  { %v488_v39 = vmul.f32 0.6931472, %v1343_v32  ;;  %v431_v32 = vld [vmem:[#allocation5 + $0x80] sm:$0xff] }
  0x4e   :  { %352 = vmatpush.msrb.mxu1 %v215_v47  ;;  %v503_v36 = vsel %vm502_vm5, %v500_v29, %v497_v28  ;;  %v483_v47 = vand.u32 2147483647, %v1335_v17  ;;  %v513_v28 = vld [vmem:[#allocation10 + $0x20] sm:$0xff] }
  0x4f   :  { %v507_v45 = vadd.f32 %v503_v36, %v443_v34  ;;  %v494_v48 = vsel %vm493_vm6, %v491_v42, %v488_v39  ;;  %v171_v34 = vmax.f32 %v1703_v57, 0.0 }
  0x50   :  { %v506_v53 = vadd.f32 %v494_v48, %v442_v46  ;;  %vm484_vm9 = vcmp.lt.f32.partialorder %v483_v47, 0.0004427343 }
  0x51   :  { %v1730_v51 = vsel %vm447_vm7, %v1706_v59, %v507_v45 }
  0x52   :  { %v520_v56 = vmul.f32 %v516_v52, %v1730_v51  ;;  %v1739_v60 = vsel %vm446_vm8, %v1709_v61, %v506_v53  ;;  %v474_v61 = vand.u32 2147483647, %v1720_v20  ;;  %v189_v53 = vld [vmem:[#allocation11] sm:$0x1] }
  0x53   :  { %354 = vmatmul.f32.vlgmr.msrb.gmra.mxu1 %v217_v19  ;;  %v477_v19 = vadd.f32 1.0, %v1335_v17  ;;  %v519_v3 = vmul.f32 %v515_v62, %v1739_v60  ;;  %v1785_v62 = vld [vmem:[#allocation8] sm:$0x1] }
  0x54   :  { %v524_v2 = vadd.f32 %v520_v56, %v1736_v58  ;;  %vm475_vm11 = vcmp.lt.f32.partialorder %v474_v61, 0.0004427343  ;;  %v367_v61 = vmul.f32 %v1695_v41, %v1695_v41 }
  0x55   :  { %1344 = vlog2.f32 %v477_v19  ;;  %v523_v12 = vadd.f32 %v519_v3, %v1746_v7  ;;  %v473_v19 = vmul.f32 %v1720_v20, %v472_v9  ;;  %v370_v3 = vmul.f32 %v1688_v37, %v1688_v37 }
  0x56   :  { %1346 = vlog2.f32 %v468_v22  ;;  %v1749_v11 = vand.u32 4294901760, %v524_v2  ;;  %v765_v9 = vmul.f32 %v1757_v16, %v1757_v16 }
  0x57   :  { %1348 = vlog2.f32 %v178_v26  ;;  %v572_v22 = vand.u32 4294901760, %v523_v12 }
  0x58   :  { %v600_v21 = vsub.f32 %v524_v2, %v1749_v11  ;;  %671 = vmatpush.msra.mxu1 %v1749_v11  ;;  %571 = vmatpush.msrb.mxu2 %v1749_v11  ;;  %1350 = vlog2.f32 %v1695_v41  ;;  %v762_v41 = vmul.f32 %v1739_v60, %v1739_v60 }
  0x59   :  { %v606_v27 = vsub.f32 %v523_v12, %v572_v22  ;;  %v764_v12 = vmul.f32 %v431_v32, %v431_v32  ;;  %1352 = vlog2.f32 %v1690_v38 }
  0x5a   :  { %v601_v26 = vand.u32 4294901760, %v600_v21  ;;  %642 = vmatpush.msra.mxu0 %v600_v21  ;;  %673 = vmatpush.msra.mxu1 %v572_v22 }
  0x5b   :  { %v1345_v44 = vpop.eup %1344  ;;  %573 = vmatpush.msrb.mxu2 %v572_v22  ;;  %v607_v31 = vand.u32 4294901760, %v606_v27 }
  0x5c   :  { %v479_v49 = vmul.f32 0.6931472, %v1345_v44  ;;  %v1347_v50 = vpop.eup %1346  ;;  %645 = vmatpush.msra.mxu0 %v606_v27 }
  0x5d   :  { %v470_v59 = vmul.f32 0.6931472, %v1347_v50  ;;  %v1349_v10 = vpop.eup %1348  ;;  %v608_v43 = vsub.f32 %v606_v27, %v607_v31 }
  0x5e   :  { %v485_v63 = vsel %vm484_vm9, %v482_v55, %v479_v49  ;;  %v180_v25 = vmul.f32 0.6931472, %v1349_v10  ;;  %v368_v10 = vmul.f32 %v1690_v38, %v1690_v38  ;;  %v384_v38 = vlaneseq }
  0x5f   :  { %v505_v4 = vadd.f32 %v485_v63, %v441_v54  ;;  %v476_v24 = vsel %vm475_vm11, %v473_v19, %v470_v59  ;;  %v609_v46 = vand.u32 4294901760, %v608_v43  ;;  %v763_v19 = vmul.f32 %v1730_v51, %v1730_v51 }
  0x60   :  { %v504_v20 = vadd.f32 %v476_v24, %v440_v14  ;;  %v372_v15 = vadd.f32 %v370_v3, %v368_v10  ;;  %v1814_v43 = vand.u32 127, %v384_v38  ;;  %vm417_vm9 = vcmask 1040384  }
  0x61   :  { %v1753_v13 = vsel %vm445_vm10, %v1712_v1, %v505_v4  ;;  %v183_v1 = vmul.f32 %v1718_v18, %v182_v6  ;;  %v602_v18 = vsub.f32 %v600_v21, %v601_v26  ;;  %v369_v4 = vmul.f32 %v1693_v40, %v1693_v40 }
  0x62   :  { %v518_v17 = vmul.f32 %v514_v8, %v1753_v13  ;;  %v508_v33 = vsel %vm444_vm12, %v1715_v5, %v504_v20  ;;  %vm388_vm0 = vcmp.lt.s32.totalorder %v1814_v43, 32  ;;  %vm1197_vm11 = vcmp.lt.s32.totalorder %v1814_v43, 8 }
  0x63   :  { %v517_v36 = vmul.f32 %v513_v28, %v508_v33  ;;  %v186_v39 = vsel %vm1768_vm13, %v183_v1, %v180_v25  ;;  %v603_v42 = vand.u32 4294901760, %v602_v18  ;;  %v760_v37 = vmul.f32 %v508_v33, %v508_v33 }
  0x64   :  { %v522_v23 = vadd.f32 %v518_v17, %v1757_v16  ;;  %v187_v47 = vadd.f32 %v186_v39, %v171_v34  ;;  %v371_v40 = vadd.f32 %v369_v4, %v367_v61  ;;  %1354 = vlog2.f32 %v508_v33 }
  0x65   :  { %v521_v45 = vadd.f32 %v517_v36, %v431_v32  ;;  %604 = vmatpush.msrb.mxu3 %v603_v42  ;;  %v761_v16 = vmul.f32 %v1753_v13, %v1753_v13  ;;  %1356 = vlog2.f32 %v1753_v13  ;;  %v766_v1 = vmul.f32 %v1746_v7, %v1746_v7 }
  0x66   :  { %v574_v30 = vand.u32 4294901760, %v522_v23  ;;  %v1782_v52 = vsel %vm172_vm14, %v1703_v57, %v187_v47  ;;  %1358 = vlog2.f32 %v1739_v60  ;;  %v767_v13 = vmul.f32 %v1736_v58, %v1736_v58 }
  0x67   :  { %v576_v49 = vand.u32 4294901760, %v521_v45  ;;  %610 = vmatpush.msrb.mxu3 %v609_v46  ;;  %v190_v56 = vmul.f32 %v189_v53, %v1782_v52  ;;  %1360 = vlog2.f32 %v1730_v51  ;;  %v373_v24 = vmul.f32 125000.5, %v371_v40 }
  0x68   :  { %v612_v35 = vsub.f32 %v522_v23, %v574_v30  ;;  %675 = vmatpush.msra.mxu1 %v574_v30  ;;  %575 = vmatpush.msrb.mxu2 %v574_v30  ;;  %v1351_v23 = vpop.eup %1350  ;;  %v374_v25 = vmul.f32 125000.5, %v372_v15  ;;  %v769_v27 = vadd.f32 %v765_v9, %v761_v16  ;;  %v771_v18 = vadd.f32 %v767_v13, %v763_v19 }
  0x69   :  { %v618_v50 = vsub.f32 %v521_v45, %v576_v49  ;;  %v191_v59 = vadd.f32 %v190_v56, %v1785_v62  ;;  %v1353_v20 = vpop.eup %1352  ;;  %v360_v29 = vmul.f32 0.6931472, %v1351_v23 }
  0x6a   :  { %v613_v44 = vand.u32 4294901760, %v612_v35  ;;  %648 = vmatpush.msra.mxu0 %v612_v35  ;;  %677 = vmatpush.msra.mxu1 %v576_v49  ;;  %v1355_v60 = vpop.eup %1354  ;;  %v362_v32 = vmul.f32 0.6931472, %v1353_v20  ;;  %v773_v33 = vmul.f32 125000.5, %v769_v27 }
  0x6b   :  { %577 = vmatpush.msrb.mxu2 %v576_v49  ;;  %v619_v54 = vand.u32 4294901760, %v618_v50  ;;  %v193_v57 = vperm.slane %v191_v59, 0  ;;  %v1357_v34 = vpop.eup %1356  ;;  %v745_v36 = vmul.f32 0.6931472, %v1355_v60  ;;  %v775_v45 = vmul.f32 125000.5, %v771_v18 }
  0x6c   :  { %v614_v48 = vsub.f32 %v612_v35, %v613_v44  ;;  %651 = vmatpush.msra.mxu0 %v618_v50  ;;  %v363_v35 = vmul.f32 2.0, %v360_v29  ;;  %v1359_v39 = vpop.eup %1358  ;;  %v364_v42 = vmul.f32 2.0, %v362_v32 }
  0x6d   :  { %700 = vmatpush.msra.mxu2 %v601_v26  ;;  %v620_v55 = vsub.f32 %v618_v50, %v619_v54  ;;  %v768_v26 = vadd.f32 %v764_v12, %v760_v37  ;;  %v1361_v46 = vpop.eup %1360 }
  0x6e   :  { %v615_v5 = vand.u32 4294901760, %v614_v48  ;;  %v365_v48 = vsub.f32 -6.214608, %v363_v35  ;;  %v366_v50 = vsub.f32 -6.214608, %v364_v42 }
  0x6f   :  { %704 = vmatpush.msra.mxu2 %v607_v31  ;;  %v621_v63 = vand.u32 4294901760, %v620_v55  ;;  %v772_v51 = vmul.f32 125000.5, %v768_v26  ;;  %v751_v53 = vmul.f32 0.6931472, %v1361_v46  ;;  %v1832_v26 = vld [vmem:[#allocation7 + $0x118] sm:$0xff] }
  0x70   :  { %616 = vmatpush.msrb.mxu3 %v615_v5  ;;  %v752_v5 = vmul.f32 2.0, %v745_v36  ;;  %v375_v56 = vadd.f32 %v373_v24, %v365_v48  ;;  %vm857_vm4 = vcmp.ne.f32.partialorder %v1832_v26, %v1832_v26 }
  0x71   :  { %708 = vmatpush.msra.mxu2 %v613_v44  ;;  %v747_v44 = vmul.f32 0.6931472, %v1357_v34  ;;  %v865_v34 = vand.u32 2147483647, %v1832_v26 }
  0x72   :  { %622 = vmatpush.msrb.mxu3 %v621_v63  ;;  %v756_v59 = vsub.f32 -6.214608, %v752_v5  ;;  %v1283_v4 = vadd.f32 -1.0, %v375_v56 }
  0x73   :  { %712 = vmatpush.msra.mxu2 %v619_v54  ;;  %v753_v54 = vmul.f32 2.0, %v747_v44  ;;  %v869_v42 = vsub.f32 0.0, %v865_v34 }
  0x74   :  { %731 = vmatpush.msra.mxu3 %v1749_v11  ;;  %v379_v12 = vmul.f32 0.5, %v1283_v4 }
  0x75   :  { %v757_v3 = vsub.f32 -6.214608, %v753_v54  ;;  %v876_v48 = vmul.f32 1.442695, %v869_v42 }
  0x76   :  { %733 = vmatpush.msra.mxu3 %v572_v22  ;;  %v391_v19 = vsel %vm388_vm0, %v379_v12, 0.0 }
  0x78   :  { %735 = vmatpush.msra.mxu3 %v574_v30  ;;  %v770_v30 = vadd.f32 %v766_v1, %v762_v41  ;;  %v1822_v41 = vld [vmem:[#allocation7 + $0x100] sm:$0xff] }
  0x79   :  { %v862_v29 = vand.u32 2147483647, %v1822_v41  ;;  %v850_v56 = vmax.f32 %v1822_v41, 0.0  ;;  %vm854_vm1 = vcmp.ne.f32.partialorder %v1822_v41, %v1822_v41 }
  0x7a   :  { %737 = vmatpush.msra.mxu3 %v576_v49  ;;  %v774_v58 = vmul.f32 125000.5, %v770_v30  ;;  %v749_v49 = vmul.f32 0.6931472, %v1359_v39 }
  0x7b   :  { %v866_v35 = vsub.f32 0.0, %v862_v29 }
  0x7c   :  { %v754_v63 = vmul.f32 2.0, %v749_v49 }
  0x7d   :  { %v870_v44 = vmul.f32 1.442695, %v866_v35 }
  0x7f   :  { %1362 = vpow2.f32 %v870_v44 }
  0x85   :  { %v1363_v49 = vpop.eup %1362 }
  0xc0   :  { %v223_v0 = vpop.f32.mrf.mxu0 }
  0xc1   :  { %v224_v2 = vadd.f32 %v223_v0, %v193_v57  ;;  %v376_v0 = vadd.f32 %v374_v25, %v366_v50  ;;  %v1830_v25 = vld [vmem:[#allocation7 + $0x110] sm:$0xff]  ;;  %v878_v50 = vadd.f32 1.0, %v1363_v49 }
  0xc2   :  { %vm856_vm3 = vcmp.ne.f32.partialorder %v1830_v25, %v1830_v25 }
  0xc3   :  { %v1284_v61 = vadd.f32 -1.0, %v376_v0 }
  0xc5   :  { %v380_v15 = vmul.f32 0.5, %v1284_v61 }
  0xc7   :  { %v305_v14 = vpop.f32.mrf.mxu3  ;;  %v392_v13 = vsel %vm388_vm0, %v380_v15, 0.0 }
  0xc8   :  { %v254_v6 = vpop.f32.mrf.mxu1  ;;  %v280_v8 = vpop.f32.mrf.mxu2  ;;  %v393_v27 = vadd.f32 %v392_v13, %v391_v19 }
  0xc9   :  { %v255_v11 = vadd.f32 %v254_v6, %v224_v2  ;;  %v332_v21 = vpop.f32.mrf.mxu0  ;;  %v755_v2 = vmul.f32 2.0, %v751_v53  ;;  %v758_v6 = vsub.f32 -6.214608, %v754_v63  ;;  %v881_v53 = vmul.f32 -0.5, %v1363_v49 }
  0xca   :  { %394 = vadd.xlane.f32.xlu0 %v393_v27 }
  0xcb   :  { %v281_v17 = vadd.f32 %v280_v8, %v255_v11  ;;  %v776_v8 = vadd.f32 %v772_v51, %v756_v59  ;;  %v759_v10 = vsub.f32 -6.214608, %v755_v2  ;;  %v777_v11 = vadd.f32 %v773_v33, %v757_v3 }
  0xcc   :  { %v778_v37 = vadd.f32 %v774_v58, %v758_v6  ;;  %v864_v33 = vand.u32 2147483647, %v1830_v25  ;;  %v852_v3 = vmax.f32 %v1830_v25, 0.0  ;;  %v882_v6 = vadd.f32 1.0, %v881_v53 }
  0xcd   :  { %v306_v22 = vadd.f32 %v305_v14, %v281_v17  ;;  %v1287_v14 = vadd.f32 -1.0, %v776_v8  ;;  %v779_v16 = vadd.f32 %v775_v45, %v759_v10  ;;  %v1288_v17 = vadd.f32 -1.0, %v777_v11 }
  0xce   :  { %v868_v39 = vsub.f32 0.0, %v864_v33 }
  0xcf   :  { %v333_v28 = vadd.f32 %v332_v21, %v306_v22  ;;  %v1289_v21 = vadd.f32 -1.0, %v778_v37  ;;  %v784_v38 = vmul.f32 0.5, %v1287_v14  ;;  %v1826_v22 = vld [vmem:[#allocation7 + $0x108] sm:$0xff]  ;;  %v1290_v23 = vadd.f32 -1.0, %v779_v16  ;;  %v1863_v14 = vld [vmem:[%s2027_s4 + $0x1] sm:$0x1] }
  0xd0   :  { %v355_v31 = vpop.f32.mrf.mxu1  ;;  %v785_v24 = vmul.f32 0.5, %v1288_v17  ;;  %v851_v2 = vmax.f32 %v1826_v22, 0.0  ;;  %vm855_vm2 = vcmp.ne.f32.partialorder %v1826_v22, %v1826_v22  ;;  %v532_v16 = vand.u32 2147483647, %v1863_v14 }
  0xd1   :  { %v356_v7 = vadd.f32 %v355_v31, %v333_v28  ;;  %v786_v20 = vmul.f32 0.5, %v1289_v21  ;;  %v798_v28 = vsel %vm388_vm0, %v784_v38, 0.0  ;;  %v787_v18 = vmul.f32 0.5, %v1290_v23 }
  0xd2   :  { %v799_v60 = vsel %vm388_vm0, %v785_v24, 0.0  ;;  %v863_v31 = vand.u32 2147483647, %v1826_v22  ;;  %v883_v17 = vmul.f32 %v1363_v49, %v882_v6  ;;  %v533_v27 = vsub.f32 0.0, %v532_v16 }
  0xd3   :  { %v358_v47 = vmax.f32 %v356_v7, 0.0  ;;  %v800_v32 = vsel %vm388_vm0, %v786_v20, 0.0  ;;  %v802_v51 = vadd.f32 %v799_v60, %v798_v28  ;;  %v801_v7 = vsel %vm388_vm0, %v787_v18, 0.0 }
  0xd4   :  { %v867_v36 = vsub.f32 0.0, %v863_v31  ;;  %v534_v44 = vmul.f32 1.442695, %v533_v27  ;;  %vm530_vm12 = vcmp.ne.f32.partialorder %v1863_v14, %v1863_v14 }
  0xd5   :  { %v556_v55 = vsel %vm554_vm15, %v358_v47, 0  ;;  %v803_v58 = vadd.f32 %v802_v51, %v800_v32  ;;  %v874_v47 = vmul.f32 1.442695, %v868_v39  ;;  %v409_v51 = vmul.f32 %v1782_v52, %v1782_v52 }
  0xd6   :  { %v1817_v57 = vand.u32 4294901760, %v556_v55  ;;  %v872_v45 = vmul.f32 1.442695, %v867_v36  ;;  %v1900_v36 = vld [vmem:[%s2027_s4 + $0x2] sm:$0x1] }
  0xd7   :  { %v804_v46 = vadd.f32 %v803_v58, %v801_v7  ;;  %vm940_vm14 = vcmp.ne.f32.partialorder %v1900_v36, %v1900_v36 }
  0xd8   :  { %v579_v9 = vsub.f32 %v556_v55, %v1817_v57  ;;  %624 = vmatmul.f32.vlgmr.msrb.gmra.mxu3 %v1817_v57  ;;  %1364 = vpow2.f32 %v872_v45  ;;  %v410_v55 = vmul.f32 %v1785_v62, %v1785_v62  ;;  %v1856_v62 = vld [vmem:[#allocation5 + $0x100] sm:$0xff] }
  0xd9   :  { %805 = vadd.xlane.f32.xlu1 %v804_v46  ;;  %1366 = vpow2.f32 %v874_v47  ;;  %v1173_v21 = vmul.f32 %v1856_v62, %v1856_v62 }
  0xda   :  { %654 = vmatmul.f32.vlgmr.msra.gmra.mxu0 %v579_v9  ;;  %v580_v40 = vand.u32 4294901760, %v579_v9  ;;  %1368 = vpow2.f32 %v876_v48  ;;  %v411_v48 = vadd.f32 %v410_v55, %v409_v51 }
  0xdb   :  { %1370 = vlog2.f32 %v878_v50  ;;  %v942_v50 = vand.u32 2147483647, %v1900_v36 }
  0xdc   :  { %681 = vmatmul.f32.vlgmr.msra.gmra.mxu1 %v580_v40  ;;  %v581_v1 = vsub.f32 %v579_v9, %v580_v40  ;;  %v884_v9 = vand.u32 2147483647, %v1363_v49  ;;  %v1865_v40 = vld [vmem:[#allocation5 + $0x108] sm:$0xff] }
  0xdd   :  { %v1174_v18 = vmul.f32 %v1865_v40, %v1865_v40 }
  0xde   :  { %v582_v30 = vand.u32 4294901760, %v581_v1  ;;  %v1365_v5 = vpop.eup %1364  ;;  %v1874_v1 = vld [vmem:[#allocation5 + $0x110] sm:$0xff]  ;;  %vm1876_vm5 = vcmp.lt.f32.partialorder %v884_v9, 0.0004427343 }
  0xdf   :  { %v1367_v54 = vpop.eup %1366  ;;  %v887_v63 = vadd.f32 1.0, %v1365_v5  ;;  %v890_v59 = vmul.f32 -0.5, %v1365_v5  ;;  %v893_v11 = vand.u32 2147483647, %v1365_v5  ;;  %v1175_v35 = vmul.f32 %v1874_v1, %v1874_v1 }
  0xe0   :  { %583 = vmatmul.f32.vlgmr.msrb.gmra.mxu2 %v582_v30  ;;  %739 = vmatmul.f32.vlgmr.msra.gmra.mxu3 %v1817_v57  ;;  %v1369_v0 = vpop.eup %1368  ;;  %v896_v4 = vadd.f32 1.0, %v1367_v54  ;;  %v899_v8 = vmul.f32 -0.5, %v1367_v54  ;;  %v902_v15 = vand.u32 2147483647, %v1367_v54 }
  0xe1   :  { %1372 = vlog2.f32 %v887_v63  ;;  %v891_v61 = vadd.f32 1.0, %v890_v59  ;;  %v905_v10 = vadd.f32 1.0, %v1369_v0  ;;  %v908_v37 = vmul.f32 -0.5, %v1369_v0  ;;  %v1371_v38 = vpop.eup %1370 }
  0xe2   :  { %1374 = vlog2.f32 %v896_v4  ;;  %v900_v12 = vadd.f32 1.0, %v899_v8  ;;  %v911_v24 = vand.u32 2147483647, %v1369_v0  ;;  %v880_v28 = vmul.f32 0.6931472, %v1371_v38 }
  0xe3   :  { %1376 = vlog2.f32 %v905_v10  ;;  %v909_v19 = vadd.f32 1.0, %v908_v37  ;;  %v892_v23 = vmul.f32 %v1365_v5, %v891_v61  ;;  %vm1880_vm6 = vcmp.lt.f32.partialorder %v893_v11, 0.0004427343 }
  0xe4   :  { %v901_v30 = vmul.f32 %v1367_v54, %v900_v12  ;;  %vm1886_vm7 = vcmp.lt.f32.partialorder %v902_v15, 0.0004427343  ;;  %1378 = vlog2.f32 %v1782_v52  ;;  %v886_v33 = vsel %vm1876_vm5, %v883_v17, %v880_v28 }
  0xe5   :  { %v910_v7 = vmul.f32 %v1369_v0, %v909_v19  ;;  %vm1904_vm8 = vcmp.lt.f32.partialorder %v911_v24, 0.0004427343  ;;  %v914_v52 = vadd.f32 %v886_v33, %v850_v56  ;;  %1380 = vpow2.f32 %v534_v44  ;;  %v926_v0 = vld [vmem:[#allocation10 + $0x58] sm:$0xff] }
  0xe6   :  { %v412_v12 = vmul.f32 125000.5, %v411_v48  ;;  %v943_v37 = vsub.f32 0.0, %v942_v50  ;;  %v529_v44 = vmax.f32 %v1863_v14, 0.0 }
  0xe7   :  { %v1373_v20 = vpop.eup %1372  ;;  %v1914_v5 = vsel %vm854_vm1, %v1822_v41, %v914_v52  ;;  %v844_v41 = vld [vmem:[#allocation5 + $0x118] sm:$0xff] }
  0xe8   :  { %714 = vmatmul.f32.vlgmr.msra.gmra.mxu2 %v1817_v57  ;;  %v853_v57 = vmax.f32 %v1832_v26, 0.0  ;;  %v1375_v60 = vpop.eup %1374  ;;  %v889_v31 = vmul.f32 0.6931472, %v1373_v20  ;;  %1382 = vlog2.f32 %v1914_v5  ;;  %v1169_v55 = vmul.f32 %v1914_v5, %v1914_v5 }
  0xe9   :  { %v898_v34 = vmul.f32 0.6931472, %v1375_v60  ;;  %v1377_v58 = vpop.eup %1376  ;;  %v1176_v9 = vmul.f32 %v844_v41, %v844_v41 }
  0xea   :  { %v895_v39 = vsel %vm1880_vm6, %v892_v23, %v889_v31  ;;  %v907_v46 = vmul.f32 0.6931472, %v1377_v58  ;;  %v1379_v56 = vpop.eup %1378 }
  0xeb   :  { %v904_v45 = vsel %vm1886_vm7, %v901_v30, %v898_v34  ;;  %v915_v47 = vadd.f32 %v895_v39, %v851_v2  ;;  %v406_v4 = vmul.f32 0.6931472, %v1379_v56  ;;  %v1381_v61 = vpop.eup %1380  ;;  %v944_v34 = vmul.f32 1.442695, %v943_v37 }
  0xec   :  { %v916_v49 = vadd.f32 %v904_v45, %v852_v3  ;;  %v913_v53 = vsel %vm1904_vm8, %v910_v7, %v907_v46  ;;  %v1177_v3 = vadd.f32 %v1173_v21, %v1169_v55  ;;  %v536_v21 = vadd.f32 1.0, %v1381_v61 }
  0xed   :  { %v1923_v54 = vsel %vm855_vm2, %v1826_v22, %v915_v47  ;;  %v917_v63 = vadd.f32 %v913_v53, %v853_v57  ;;  %v407_v11 = vmul.f32 2.0, %v406_v4  ;;  %v542_v33 = vand.u32 2147483647, %v1381_v61 }
  0xee   :  { %v1934_v59 = vsel %vm856_vm3, %v1830_v25, %v916_v49  ;;  %1384 = vlog2.f32 %v1923_v54  ;;  %v1170_v22 = vmul.f32 %v1923_v54, %v1923_v54  ;;  %v1383_v15 = vpop.eup %1382  ;;  %v1181_v17 = vmul.f32 125000.5, %v1177_v3 }
  0xef   :  { %1386 = vlog2.f32 %v1934_v59  ;;  %v1171_v2 = vmul.f32 %v1934_v59, %v1934_v59  ;;  %v921_v57 = vsel %vm857_vm4, %v1832_v26, %v917_v63  ;;  %v1154_v13 = vmul.f32 0.6931472, %v1383_v15  ;;  %v1970_v15 = vld [vmem:[#allocation8 + $0x1] sm:$0x1] }
  0xf0   :  { %v1178_v25 = vadd.f32 %v1174_v18, %v1170_v22  ;;  %v930_v6 = vmul.f32 %v926_v0, %v921_v57  ;;  %1388 = vlog2.f32 %v921_v57  ;;  %v1172_v8 = vmul.f32 %v921_v57, %v921_v57 }
  0xf1   :  { %v1179_v10 = vadd.f32 %v1175_v35, %v1171_v2  ;;  %v408_v23 = vsub.f32 -6.214608, %v407_v11  ;;  %v539_v26 = vmul.f32 -0.5, %v1381_v61  ;;  %1390 = vlog2.f32 %v536_v21 }
  0xf2   :  { %v1946_v16 = vadd.f32 %v930_v6, %v844_v41  ;;  %v1182_v19 = vmul.f32 125000.5, %v1178_v25  ;;  %v1180_v28 = vadd.f32 %v1176_v9, %v1172_v8  ;;  %v1161_v30 = vmul.f32 2.0, %v1154_v13 }
  0xf3   :  { %v1183_v18 = vmul.f32 125000.5, %v1179_v10  ;;  %v413_v60 = vadd.f32 %v412_v12, %v408_v23  ;;  %v540_v51 = vadd.f32 1.0, %v539_v26  ;;  %vm1954_vm10 = vcmp.lt.f32.partialorder %v542_v33, 0.0004427343 }
  0xf4   :  { %v1385_v38 = vpop.eup %1384  ;;  %v1949_v27 = vand.u32 4294901760, %v1946_v16  ;;  %v1165_v58 = vsub.f32 -6.214608, %v1161_v30  ;;  %v1184_v52 = vmul.f32 125000.5, %v1180_v28  ;;  %1392 = vpow2.f32 %v944_v34 }
  0xf5   :  { %v1387_v24 = vpop.eup %1386  ;;  %v1156_v20 = vmul.f32 0.6931472, %v1385_v38  ;;  %v1285_v39 = vadd.f32 -1.0, %v413_v60  ;;  %v541_v53 = vmul.f32 %v1381_v61, %v540_v51  ;;  %v821_v28 = vmul.f32 %v1970_v15, %v1970_v15 }
  0xf6   :  { %v1158_v29 = vmul.f32 0.6931472, %v1387_v24  ;;  %v1389_v31 = vpop.eup %1388  ;;  %1080 = vmatpush.msrb.mxu3 %v1949_v27  ;;  %980 = vmatpush.msrb.mxu0 %v1949_v27  ;;  %v1185_v47 = vadd.f32 %v1181_v17, %v1165_v58  ;;  %v939_v33 = vmax.f32 %v1900_v36, 0.0 }
  0xf7   :  { %v1162_v32 = vmul.f32 2.0, %v1156_v20  ;;  %v1160_v7 = vmul.f32 0.6931472, %v1389_v31  ;;  %v415_v48 = vmul.f32 0.5, %v1285_v39  ;;  %v1391_v49 = vpop.eup %1390 }
  0xf8   :  { %v1163_v35 = vmul.f32 2.0, %v1158_v29  ;;  %v1293_v63 = vadd.f32 -1.0, %v1185_v47  ;;  %v538_v3 = vmul.f32 0.6931472, %v1391_v49 }
  0xf9   :  { %v1166_v42 = vsub.f32 -6.214608, %v1162_v32  ;;  %v1164_v45 = vmul.f32 2.0, %v1160_v7  ;;  %v416_v0 = vsel %vm388_vm0, %v415_v48, 0.0 }
  0xfa   :  { %v1167_v46 = vsub.f32 -6.214608, %v1163_v35  ;;  %v418_v2 = vsel %vm417_vm9, %v416_v0, 0.0  ;;  %v1193_v25 = vmul.f32 0.5, %v1293_v63  ;;  %v544_v8 = vsel %vm1954_vm10, %v541_v53, %v538_v3  ;;  %v1393_v12 = vpop.eup %1392 }
  0xfb   :  { %v1186_v50 = vadd.f32 %v1182_v19, %v1166_v42  ;;  %v1168_v56 = vsub.f32 -6.214608, %v1164_v45  ;;  %419 = vadd.xlane.f32.xlu0 %v418_v2  ;;  %v545_v11 = vadd.f32 %v544_v8, %v529_v44  ;;  %v946_v13 = vadd.f32 1.0, %v1393_v12  ;;  %v1987_v44 = vld [vmem:[#allocation8 + $0x2] sm:$0x1]  ;;  %v924_v8 = vld [vmem:[#allocation10 + $0x48] sm:$0xff] }
  0xfc   :  { %v1187_v41 = vadd.f32 %v1183_v18, %v1167_v46  ;;  %v1202_v10 = vsel %vm1197_vm11, %v1193_v25, 0.0  ;;  %v949_v23 = vmul.f32 -0.5, %v1393_v12  ;;  %v952_v18 = vand.u32 2147483647, %v1393_v12  ;;  %v925_v25 = vld [vmem:[#allocation10 + $0x50] sm:$0xff] }
  0xfd   :  { %v1294_v22 = vadd.f32 -1.0, %v1186_v50  ;;  %v1188_v4 = vadd.f32 %v1184_v52, %v1168_v56  ;;  %v1975_v38 = vsel %vm530_vm12, %v1863_v14, %v545_v11  ;;  %v1225_v48 = vmul.f32 %v1987_v44, %v1987_v44 }
  0xfe   :  { %v1295_v57 = vadd.f32 -1.0, %v1187_v41  ;;  %1394 = vlog2.f32 %v1975_v38  ;;  %v820_v20 = vmul.f32 %v1975_v38, %v1975_v38  ;;  %v950_v30 = vadd.f32 1.0, %v949_v23 }
  0xff   :  { %v1194_v6 = vmul.f32 0.5, %v1294_v22  ;;  %v1296_v9 = vadd.f32 -1.0, %v1188_v4  ;;  %1396 = vlog2.f32 %v946_v13  ;;  %vm953_vm13 = vcmp.lt.f32.partialorder %v952_v18, 0.0004427343  ;;  %v548_v18 = vld [vmem:[#allocation11 + $0x1] sm:$0x1] }
 0x100   :  { %v1195_v61 = vmul.f32 0.5, %v1295_v57  ;;  %v822_v14 = vadd.f32 %v821_v28, %v820_v20  ;;  %v951_v32 = vmul.f32 %v1393_v12, %v950_v30  ;;  %v1009_v11 = vsub.f32 %v1946_v16, %v1949_v27 }
 0x101   :  { %v1203_v37 = vsel %vm1197_vm11, %v1194_v6, 0.0  ;;  %v1196_v17 = vmul.f32 0.5, %v1296_v9  ;;  %v929_v6 = vmul.f32 %v925_v25, %v1934_v59 }
 0x102   :  { %v1204_v19 = vsel %vm1197_vm11, %v1195_v61, 0.0  ;;  %v1206_v21 = vadd.f32 %v1203_v37, %v1202_v10  ;;  %v823_v7 = vmul.f32 125000.5, %v822_v14  ;;  %v928_v61 = vmul.f32 %v924_v8, %v1923_v54  ;;  %v923_v10 = vld [vmem:[#allocation10 + $0x40] sm:$0xff]  ;;  %1051 = vmatpush.msrb.mxu2 %v1009_v11 }
 0x103   :  { %v1205_v26 = vsel %vm1197_vm11, %v1196_v17, 0.0  ;;  %v933_v9 = vadd.f32 %v929_v6, %v1874_v1  ;;  %v927_v43 = vmul.f32 %v923_v10, %v1914_v5  ;;  %v1010_v17 = vand.u32 4294901760, %v1009_v11 }
 0x104   :  { %v1207_v24 = vadd.f32 %v1206_v21, %v1204_v19  ;;  %v1395_v60 = vpop.eup %1394  ;;  %v932_v37 = vadd.f32 %v928_v61, %v1865_v40  ;;  %v549_v14 = vmul.f32 %v548_v18, %v1975_v38 }
 0x105   :  { %v817_v31 = vmul.f32 0.6931472, %v1395_v60  ;;  %v1397_v51 = vpop.eup %1396  ;;  %v981_v12 = vand.u32 4294901760, %v933_v9  ;;  %v931_v59 = vadd.f32 %v927_v43, %v1856_v62  ;;  %v1011_v1 = vsub.f32 %v1009_v11, %v1010_v17 }
 0x106   :  { %v1208_v29 = vadd.f32 %v1207_v24, %v1205_v26  ;;  %v948_v35 = vmul.f32 0.6931472, %v1397_v51  ;;  %v983_v21 = vand.u32 4294901760, %v932_v37  ;;  %v550_v60 = vadd.f32 %v549_v14, %v1970_v15 }
 0x107   :  { %v818_v34 = vmul.f32 2.0, %v817_v31  ;;  %v1015_v19 = vsub.f32 %v933_v9, %v981_v12  ;;  %1082 = vmatpush.msrb.mxu3 %v981_v12  ;;  %982 = vmatpush.msrb.mxu0 %v981_v12  ;;  %v985_v23 = vand.u32 4294901760, %v931_v59  ;;  %v1012_v16 = vand.u32 4294901760, %v1011_v1 }
 0x108   :  { %1209 = vadd.xlane.f32.xlu2 %v1208_v29  ;;  %v954_v39 = vsel %vm953_vm13, %v951_v32, %v948_v35  ;;  %v1021_v54 = vsub.f32 %v932_v37, %v983_v21  ;;  %v552_v31 = vperm.slane %v550_v60, 0 }
 0x109   :  { %v819_v58 = vsub.f32 -6.214608, %v818_v34  ;;  %v955_v42 = vadd.f32 %v954_v39, %v939_v33  ;;  %v1016_v13 = vand.u32 4294901760, %v1015_v19  ;;  %1054 = vmatpush.msrb.mxu2 %v1015_v19  ;;  %1084 = vmatpush.msrb.mxu3 %v983_v21  ;;  %v1027_v24 = vsub.f32 %v931_v59, %v985_v23 }
 0x10a   :  { %984 = vmatpush.msrb.mxu0 %v983_v21  ;;  %v1022_v40 = vand.u32 4294901760, %v1021_v54  ;;  %1013 = vmatpush.msrb.mxu1 %v1012_v16 }
 0x10b   :  { %v824_v52 = vadd.f32 %v823_v7, %v819_v58  ;;  %v1990_v45 = vsel %vm940_vm14, %v1900_v36, %v955_v42  ;;  %v1017_v26 = vsub.f32 %v1015_v19, %v1016_v13  ;;  %1057 = vmatpush.msrb.mxu2 %v1021_v54  ;;  %1086 = vmatpush.msrb.mxu3 %v985_v23  ;;  %v1028_v62 = vand.u32 4294901760, %v1027_v24 }
 0x10c   :  { %1398 = vlog2.f32 %v1990_v45  ;;  %v1224_v47 = vmul.f32 %v1990_v45, %v1990_v45  ;;  %986 = vmatpush.msrb.mxu0 %v985_v23  ;;  %v1023_v20 = vsub.f32 %v1021_v54, %v1022_v40 }
 0x10d   :  { %v1291_v46 = vadd.f32 -1.0, %v824_v52  ;;  %v1018_v5 = vand.u32 4294901760, %v1017_v26  ;;  %1060 = vmatpush.msrb.mxu2 %v1027_v24  ;;  %v1029_v29 = vsub.f32 %v1027_v24, %v1028_v62 }
 0x10e   :  { %v1226_v55 = vadd.f32 %v1225_v48, %v1224_v47  ;;  %1109 = vmatpush.msra.mxu0 %v1010_v17  ;;  %v1024_v28 = vand.u32 4294901760, %v1023_v20 }
 0x10f   :  { %v826_v49 = vmul.f32 0.5, %v1291_v46  ;;  %1019 = vmatpush.msrb.mxu1 %v1018_v5  ;;  %v1030_v30 = vand.u32 4294901760, %v1029_v29 }
 0x110   :  { %v1227_v63 = vmul.f32 125000.5, %v1226_v55  ;;  %1113 = vmatpush.msra.mxu0 %v1016_v13 }
 0x111   :  { %v827_v50 = vsel %vm388_vm0, %v826_v49, 0.0  ;;  %1025 = vmatpush.msrb.mxu1 %v1024_v28 }
 0x112   :  { %v828_v53 = vsel %vm417_vm9, %v827_v50, 0.0  ;;  %v1399_v56 = vpop.eup %1398  ;;  %1117 = vmatpush.msra.mxu0 %v1022_v40 }
 0x113   :  { %829 = vadd.xlane.f32.xlu1 %v828_v53  ;;  %v1221_v36 = vmul.f32 0.6931472, %v1399_v56  ;;  %1031 = vmatpush.msrb.mxu1 %v1030_v30 }
 0x114   :  { %1121 = vmatpush.msra.mxu0 %v1028_v62 }
 0x115   :  { %v1222_v41 = vmul.f32 2.0, %v1221_v36  ;;  %1140 = vmatpush.msra.mxu1 %v1949_v27 }
 0x117   :  { %v1223_v0 = vsub.f32 -6.214608, %v1222_v41  ;;  %1142 = vmatpush.msra.mxu1 %v981_v12 }
 0x119   :  { %v1228_v22 = vadd.f32 %v1227_v63, %v1223_v0  ;;  %1144 = vmatpush.msra.mxu1 %v983_v21 }
 0x11b   :  { %v1297_v2 = vadd.f32 -1.0, %v1228_v22  ;;  %1146 = vmatpush.msra.mxu1 %v985_v23 }
 0x11d   :  { %v1230_v3 = vmul.f32 0.5, %v1297_v2 }
 0x11f   :  { %v1231_v4 = vsel %vm1197_vm11, %v1230_v3, 0.0 }
 0x120   :  { %v1232_v57 = vsel %vm417_vm9, %v1231_v4, 0.0 }
 0x121   :  { %1233 = vadd.xlane.f32.xlu2 %v1232_v57 }
 0x13d   :  { %v395_v49 = vpop.xlane.xlu0 %394 }
 0x13e   :  { %v396_v63 = vrot.slane %v395_v49, 4 }
 0x140   :  { %v397_v2 = vadd.f32 %v396_v63, %v395_v49 }
 0x142   :  { %v398_v57 = vrot.slane %v397_v2, 2 }
 0x144   :  { %v399_v61 = vadd.f32 %v398_v57, %v397_v2 }
 0x146   :  { %v400_v12 = vrot.slane %v399_v61, 1 }
 0x148   :  { %v401_v19 = vadd.f32 %v400_v12, %v399_v61 }
 0x14a   :  { %1298 = vpush %v401_v19 }
 0x14c   :  { %v806_v41 = vpop.xlane.xlu1 %805 }
 0x14d   :  { %v807_v0 = vrot.slane %v806_v41, 4 }
 0x14f   :  { %v808_v3 = vadd.f32 %v807_v0, %v806_v41 }
 0x151   :  { %v809_v25 = vrot.slane %v808_v3, 2 }
 0x153   :  { %v810_v11 = vadd.f32 %v809_v25, %v808_v3 }
 0x155   :  { %v811_v37 = vrot.slane %v810_v11, 1 }
 0x157   :  { %v655_v7 = vpop.f32.mrf.mxu0  ;;  %v812_v21 = vadd.f32 %v811_v37, %v810_v11 }
 0x159   :  { %v682_v58 = vpop.f32.mrf.mxu1 }
 0x15b   :  { %v625_v32 = vpop.f32.mrf.mxu3 }
 0x163   :  { %v584_v51 = vpop.f32.mrf.mxu2  ;;  %v740_v27 = vpop.f32.mrf.mxu3 }
 0x164   :  { %v585_v33 = vadd.f32 %v584_v51, %v552_v31 }
 0x166   :  { %v626_v34 = vadd.f32 %v625_v32, %v585_v33 }
 0x168   :  { %v656_v35 = vadd.f32 %v655_v7, %v626_v34 }
 0x16a   :  { %v683_v39 = vadd.f32 %v682_v58, %v656_v35 }
 0x16b   :  { %v715_v42 = vpop.f32.mrf.mxu2 }
 0x16c   :  { %v716_v52 = vadd.f32 %v715_v42, %v683_v39 }
 0x16e   :  { %v741_v46 = vadd.f32 %v740_v27, %v716_v52  ;;  %v420_v56 = vpop.xlane.xlu0 %419  ;;  %v958_v27 = vld [vmem:[#allocation11 + $0x2] sm:$0x1] }
 0x16f   :  { %v421_v36 = vrot.slane %v420_v56, 4 }
 0x170   :  { %v743_v47 = vmax.f32 %v741_v46, 0.0  ;;  %v959_v46 = vmul.f32 %v958_v27, %v1990_v45 }
 0x171   :  { %v422_v22 = vadd.f32 %v421_v36, %v420_v56 }
 0x172   :  { %v965_v38 = vsel %vm554_vm15, %v743_v47, 0  ;;  %vm1245_vm15 = vcmask 0   ;;  %v960_v47 = vadd.f32 %v959_v46, %v1987_v44 }
 0x173   :  { %v987_v48 = vand.u32 4294901760, %v965_v38  ;;  %v423_v4 = vrot.slane %v422_v22, 2 }
 0x175   :  { %v988_v50 = vsub.f32 %v965_v38, %v987_v48  ;;  %1033 = vmatmul.f32.vlgmr.msrb.gmra.mxu1 %v987_v48  ;;  %v424_v6 = vadd.f32 %v423_v4, %v422_v22  ;;  %v962_v38 = vperm.slane %v960_v47, 0 }
 0x177   :  { %1063 = vmatmul.f32.vlgmr.msrb.gmra.mxu2 %v988_v50  ;;  %v989_v15 = vand.u32 4294901760, %v988_v50  ;;  %v425_v10 = vrot.slane %v424_v6, 1 }
 0x179   :  { %1090 = vmatmul.f32.vlgmr.msrb.gmra.mxu3 %v989_v15  ;;  %v990_v53 = vsub.f32 %v988_v50, %v989_v15  ;;  %v426_v43 = vadd.f32 %v425_v10, %v424_v6 }
 0x17b   :  { %v991_v55 = vand.u32 4294901760, %v990_v53  ;;  %v1210_v8 = vpop.xlane.xlu2 %1209  ;;  %1300 = vpush %v426_v43  ;;  %s1299_s4 = spop %1298 }
 0x17c   :  { %v1211_v9 = vrot.slane %v1210_v8, 4  ;;  %1302 = vpush %v812_v21  ;;  %v403_v31 = vstv %s1299_s4 }
 0x17d   :  { %992 = vmatmul.f32.vlgmr.msrb.gmra.mxu0 %v991_v55  ;;  %1148 = vmatmul.f32.vlgmr.msra.gmra.mxu1 %v987_v48 }
 0x17e   :  { %v1212_v17 = vadd.f32 %v1211_v9, %v1210_v8 }
 0x180   :  { %v1213_v59 = vrot.slane %v1212_v17, 2 }
 0x182   :  { %v1214_v54 = vadd.f32 %v1213_v59, %v1212_v17 }
 0x184   :  { %v1215_v26 = vrot.slane %v1214_v54, 1 }
 0x185   :  { %1123 = vmatmul.f32.vlgmr.msra.gmra.mxu0 %v987_v48 }
 0x186   :  { %v830_v1 = vpop.xlane.xlu1 %829  ;;  %v1216_v5 = vadd.f32 %v1215_v26, %v1214_v54 }
 0x187   :  { %v831_v13 = vrot.slane %v830_v1, 4 }
 0x189   :  { %v832_v23 = vadd.f32 %v831_v13, %v830_v1 }
 0x18b   :  { %v833_v16 = vrot.slane %v832_v23, 2 }
 0x18d   :  { %v834_v40 = vadd.f32 %v833_v16, %v832_v23 }
 0x18f   :  { %v835_v24 = vrot.slane %v834_v40, 1 }
 0x191   :  { %v836_v20 = vadd.f32 %v835_v24, %v834_v40 }
 0x193   :  { %1304 = vpush %v836_v20 }
 0x194   :  { %1306 = vpush %v1216_v5  ;;  %v1234_v62 = vpop.xlane.xlu2 %1233 }
 0x195   :  { %v1235_v28 = vrot.slane %v1234_v62, 4 }
 0x197   :  { %v1236_v29 = vadd.f32 %v1235_v28, %v1234_v62 }
 0x199   :  { %v1237_v30 = vrot.slane %v1236_v29, 2 }
 0x19b   :  { %v1238_v18 = vadd.f32 %v1237_v30, %v1236_v29 }
 0x19d   :  { %v1239_v14 = vrot.slane %v1238_v18, 1 }
 0x19f   :  { %v1240_v60 = vadd.f32 %v1239_v14, %v1238_v18 }
 0x1a1   :  { %1308 = vpush %v1240_v60 }
 0x1ac   :  { %s1301_s1 = spop %1300 }
 0x1ad   :  { %v428_v32 = vstv %s1301_s1  ;;  %s1303_s17 = spop %1302 }
 0x1ae   :  { %v429_v51 = vadd.f32 %v428_v32, %v403_v31  ;;  %v814_v33 = vstv %s1303_s17 }
 0x1b0   :  { %v815_v34 = vadd.f32 %v814_v33, %v429_v51 }
 0x1c4   :  { %s1305_s18 = spop %1304 }
 0x1c5   :  { %v838_v7 = vstv %s1305_s18  ;;  %s1307_s19 = spop %1306 }
 0x1c6   :  { %v839_v35 = vadd.f32 %v838_v7, %v815_v34  ;;  %v1218_v58 = vstv %s1307_s19 }
 0x1c8   :  { %v1219_v39 = vadd.f32 %v1218_v58, %v839_v35 }
 0x1d2   :  { %s1309_s24 = spop %1308 }
 0x1d3   :  { %v1242_v42 = vstv %s1309_s24 }
 0x1d4   :  { %v1243_v52 = vadd.f32 %v1242_v42, %v1219_v39 }
 0x1d6   :  { %1246 = vst.msk [vmem:[#allocation14] sm:$0x1] %vm1245_vm15, %v1243_v52 }
 0x1d7   :  { %1268 = dma.vmem_to_hbm [thread:$0]  %s1264_s21, 16, %s1266_s23, [#allocation15]  }
 0x1f2   :  { %v1034_v48 = vpop.f32.mrf.mxu1 }
 0x1fa   :  { %v993_v49 = vpop.f32.mrf.mxu0  ;;  %v1064_v53 = vpop.f32.mrf.mxu2 }
 0x1fb   :  { %v994_v50 = vadd.f32 %v993_v49, %v962_v38  ;;  %v1149_v0 = vpop.f32.mrf.mxu1 }
 0x1fc   :  { %v1091_v56 = vpop.f32.mrf.mxu3 }
 0x1fd   :  { %v1035_v15 = vadd.f32 %v1034_v48, %v994_v50 }
 0x1ff   :  { %v1065_v55 = vadd.f32 %v1064_v53, %v1035_v15 }
 0x201   :  { %v1092_v36 = vadd.f32 %v1091_v56, %v1065_v55 }
 0x202   :  { %v1124_v41 = vpop.f32.mrf.mxu0 }
 0x203   :  { %v1125_v63 = vadd.f32 %v1124_v41, %v1092_v36 }
 0x205   :  { %v1150_v45 = vadd.f32 %v1149_v0, %v1125_v63 }
 0x207   :  { %v1152_v44 = vmax.f32 %v1150_v45, 0.0 }
 0x209   :  { %1244 = vst [vmem:[#allocation13] sm:$0xff] %v1152_v44 }
 0x20a   :  { %1257 = dma.vmem_to_hbm [thread:$0]  %s1253_s25, 128, %s1255_s28, [#allocation4]  }
 0x20b   :  { %1600 = dma.done.wait [#allocation4], 128  }
 0x20c   :  { %1601 = vsyncadd [#allocation4], 4294967168 }
 0x20d   :  { %1602 = dma.done.wait [#allocation15], 16  }
 0x20e   :  { %1603 = vsyncadd [#allocation15], 4294967280 }
 0x20f   :  { %1277 = vsyncpa [#allocation3], 1 }
 0x210   :  { %1278 = vsyncpa [#allocation6], 1 }
 0x211   :  { %1279 = vsyncpa [#allocation9], 1 }
 0x212   :  { %1280 = vsyncpa [#allocation12], 1 }
 0x213   :  { %1281 = vsyncpa [#allocation4], 1 }
 0x214   :  { %1282 = vsyncpa [#allocation15], 1 }

</bundles_post_ra>
